<compile_context>
chip_gen: v7x
topology: tpu7x:2x2x1
jax: 0.10.0
libtpu: 0.0.40
codegen_flags: <defaults>
</compile_context>

<pallas_src>
import functools

import numpy as np
import jax
import jax.numpy as jnp
from jax.experimental import pallas as pl
from jax.experimental.pallas import tpu as pltpu

ACTIVITY_SIZE = 128.0


def _round_up(x, m):
    return ((x + m - 1) // m) * m


# ----------------------------------------------------------------------------
# Pallas kernel: per-batch-tile loss / mining / accuracy statistics
# ----------------------------------------------------------------------------
def _multibox_stats_kernel(bbox_ref, loct_ref, scores_ref, conft_ref, out_ref,
                           *, negpos_ratio, num_classes, bisect_iters):
    C = scores_ref.shape[0]
    P = scores_ref.shape[2]

    bbox = bbox_ref[...]                                # (2, bt, P)
    loct = loct_ref[...]                                # (2, bt, P)
    scores = scores_ref[...].astype(jnp.float32)        # (C, bt, P)
    conft = conft_ref[...]                              # (bt, P) int32

    pos = conft > 0                                     # (bt, P)
    pos_f = pos.astype(jnp.float32)

    # --- smooth-L1 localization loss over positive priors (sum reduction) ----
    d = bbox - loct
    ad = jnp.abs(d)
    sl1 = jnp.where(ad < 1.0, 0.5 * d * d, ad - 0.5)    # (2, bt, P)
    loss_l = jnp.sum((sl1[0] + sl1[1]) * pos_f)

    # --- per-prior softmax cross-entropy; class axis unrolled (C small/static),
    #     every per-class slice is a full (bt, P) vreg tile ---------------------
    cls_f = [(conft == c).astype(jnp.float32) for c in range(num_classes)]

    m = scores[0]
    for c in range(1, C):
        m = jnp.maximum(m, scores[c])                   # per-prior max logit
    sexp = jnp.zeros_like(m)
    gathered = jnp.zeros_like(m)
    pred = jnp.zeros(conft.shape, jnp.int32)
    for c in range(C - 1, -1, -1):                      # descending so first argmax wins
        r = scores[c]
        sexp = sexp + jnp.exp(r - m)
        gathered = gathered + cls_f[c] * r
        pred = jnp.where(r == m, c, pred)
    ce = jnp.log(sexp) + m - gathered                   # (bt, P)

    # --- hard negative mining: per-sample k-th-largest threshold (bisection) -
    # Selected negatives == top-num_neg CE values among non-positive priors.
    masked = jnp.maximum(jnp.where(pos, 0.0, ce), 0.0)            # (bt, P), >= 0
    num_pos = jnp.sum(pos_f, axis=-1, keepdims=True)              # (bt, 1)
    num_neg = jnp.minimum(negpos_ratio * num_pos, float(P - 1))   # (bt, 1)

    hi0 = jnp.max(masked, axis=-1, keepdims=True) + 1.0
    lo0 = jnp.zeros_like(hi0)

    def _bisect(_, carry):
        lo, hi = carry
        mid = 0.5 * (lo + hi)
        cnt = jnp.sum((masked >= mid).astype(jnp.float32), axis=-1, keepdims=True)
        take = cnt >= num_neg                           # keep invariant cnt(lo) >= num_neg
        return jnp.where(take, mid, lo), jnp.where(take, hi, mid)

    lo, _ = jax.lax.fori_loop(0, bisect_iters, _bisect, (lo0, hi0), unroll=True)
    neg = masked >= lo                                  # (bt, P); empty when num_neg == 0

    sel = jnp.logical_or(pos, neg)                      # selected priors
    sel_f = sel.astype(jnp.float32)
    corr_f = (pred == conft).astype(jnp.float32) * sel_f

    # --- scalar statistics straight into the SMEM output block ---------------
    out_ref[0, 0] = loss_l
    out_ref[0, 1] = jnp.sum(pos_f)                      # total positives
    out_ref[0, 2] = jnp.sum(ce * sel_f)                 # summed CE over pos|neg
    out_ref[0, 3] = jnp.sum(sel_f)                      # number selected
    out_ref[0, 4] = jnp.sum(corr_f)                     # total correct among selected
    for c in range(num_classes):
        out_ref[0, 5 + c] = jnp.sum(cls_f[c] * corr_f)              # per-class correct
        out_ref[0, 5 + num_classes + c] = jnp.sum(cls_f[c] * sel_f)  # per-class count


def multibox_stats_pallas(bbox_pred_t, loc_t_t, scores_t, conf_t, *,
                          negpos_ratio, num_classes, batch_tile=256,
                          bisect_iters=20):
    """Inputs: bbox/loc (2,N,P) f32, scores (C,N,P) f32, conf_t (N,P) int32."""
    _, N, P = bbox_pred_t.shape
    C = scores_t.shape[0]
    assert C == num_classes
    n_stats = 5 + 2 * num_classes

    # --- batch tile: sublane-aligned (x8), bounded by a VMEM budget that is
    #     safe on v7x's smaller VMEM, and split into >= 2 grid steps when the
    #     batch allows it so both v7x TensorCores get work -------------------
    N8 = _round_up(N, 8)
    bytes_per_sample = (2 + 2 + C + 1) * P * 4
    vmem_budget = 8 * 1024 * 1024                       # double-buffered input blocks
    bt_vmem = max(8, (vmem_budget // (2 * bytes_per_sample)) // 8 * 8)
    bt = min(_round_up(min(batch_tile, N8), 8), bt_vmem, N8)
    if N8 >= 16 and N8 <= bt:
        bt = max(8, _round_up(pl.cdiv(N8, 2), 8))       # force >= 2 grid steps
    nb = pl.cdiv(max(N, 1), bt)
    n_pad = nb * bt - N
    if n_pad:
        # padded samples have conf_t == 0 everywhere -> contribute nothing
        pad_b = ((0, 0), (0, n_pad), (0, 0))
        bbox_pred_t = jnp.pad(bbox_pred_t, pad_b)
        loc_t_t = jnp.pad(loc_t_t, pad_b)
        scores_t = jnp.pad(scores_t, pad_b)
        conf_t = jnp.pad(conf_t, ((0, n_pad), (0, 0)))

    kernel = functools.partial(_multibox_stats_kernel,
                               negpos_ratio=float(negpos_ratio),
                               num_classes=num_classes,
                               bisect_iters=bisect_iters)
    return pl.pallas_call(
        kernel,
        out_shape=jax.ShapeDtypeStruct((nb, n_stats), jnp.float32),
        grid=(nb,),
        in_specs=[
            pl.BlockSpec((2, bt, P), lambda b: (0, b, 0)),
            pl.BlockSpec((2, bt, P), lambda b: (0, b, 0)),
            pl.BlockSpec((C, bt, P), lambda b: (0, b, 0)),
            pl.BlockSpec((bt, P), lambda b: (b, 0)),
        ],
        out_specs=pl.BlockSpec((1, n_stats), lambda b: (b, 0),
                               memory_space=pltpu.MemorySpace.SMEM),
        compiler_params=pltpu.CompilerParams(
            dimension_semantics=("parallel",),          # batch tiles are disjoint
            vmem_limit_bytes=32 * 1024 * 1024),
    )(bbox_pred_t, loc_t_t, scores_t, conf_t)


# ----------------------------------------------------------------------------
# Plain-JAX glue: 1-D SSD-style ground-truth <-> prior matching (vmapped)
# ----------------------------------------------------------------------------
def match_1d(threshold, truths, labels, valid, priors):
    """truths: (G,2), labels: (G,), valid: (G,) bool, priors: (P,2); point form.
       Returns loc (2,P) encoded targets, conf (P,) int32 labels."""
    G = truths.shape[0]
    P = priors.shape[0]
    inter = jnp.clip(
        jnp.minimum(truths[:, None, 1], priors[None, :, 1])
        - jnp.maximum(truths[:, None, 0], priors[None, :, 0]), 0.0)
    area_t = truths[:, 1] - truths[:, 0]
    area_p = priors[:, 1] - priors[:, 0]
    union = jnp.maximum(area_t[:, None] + area_p[None, :] - inter, 1e-12)
    iou = inter / union                                     # (G, P)
    iou = jnp.where(valid[:, None], iou, -1.0)              # padded GTs never match

    best_truth_overlap = jnp.max(iou, axis=0)               # (P,)
    best_truth_idx = jnp.argmax(iou, axis=0)                # (P,)
    best_prior_idx = jnp.argmax(iou, axis=1)                # (G,)
    # make sure every (valid) ground truth keeps its best prior
    safe_idx = jnp.where(valid, best_prior_idx, P)          # OOB -> dropped
    best_truth_overlap = best_truth_overlap.at[safe_idx].set(2.0, mode='drop')
    best_truth_idx = best_truth_idx.at[safe_idx].set(jnp.arange(G), mode='drop')

    matched = truths[best_truth_idx]                        # (P, 2)
    conf = labels[best_truth_idx]
    conf = jnp.where(best_truth_overlap < threshold, 0, conf)

    # encode (center offset / prior length, log length ratio), variances (0.1, 0.2)
    p_c = (priors[:, 0] + priors[:, 1]) * 0.5
    p_l = jnp.maximum(priors[:, 1] - priors[:, 0], 1e-6)
    g_c = (matched[:, 0] + matched[:, 1]) * 0.5
    g_l = jnp.maximum(matched[:, 1] - matched[:, 0], 1e-6)
    loc = jnp.stack([(g_c - p_c) / (0.1 * p_l), jnp.log(g_l / p_l) / 0.2], axis=0)
    return loc.astype(jnp.float32), conf.astype(jnp.int32)


# ----------------------------------------------------------------------------
# Module wrapper mirroring the PyTorch MultiBoxLoss.forward
# ----------------------------------------------------------------------------
class MultiBoxLoss:
    def __init__(self, num_classes, overlap_thresh, neg_pos):
        self.num_classes = num_classes
        self.threshold = overlap_thresh
        self.negpos_ratio = neg_pos
        self.activity_height = ACTIVITY_SIZE

    def forward(self, prediction, targets):
        bbox_pred, scores, boxes = prediction
        num = bbox_pred.shape[0]
        priors = jnp.squeeze(boxes)                          # (P, 2)
        num_priors = priors.shape[0]

        # ---- pad ragged GT lists to a common length and vmap the matching ---
        g_max = max(1, max(len(t['gt_label']) for t in targets))
        truths_np = np.zeros((num, g_max, 2), np.float32)
        truths_np[..., 1] = 1.0                              # harmless dummy box [0,1]
        labels_np = np.zeros((num, g_max), np.int32)
        valid_np = np.zeros((num, g_max), bool)
        for i, t in enumerate(targets):
            g = len(t['gt_label'])
            truths_np[i, :g] = np.asarray(t['gt_boxes'], np.float32) / ACTIVITY_SIZE
            labels_np[i, :g] = np.asarray(t['gt_label'], np.int32)
            valid_np[i, :g] = True

        matcher = jax.vmap(functools.partial(match_1d, self.threshold),
                           in_axes=(0, 0, 0, None), out_axes=(1, 0))
        loc_t, conf_t = matcher(jnp.asarray(truths_np), jnp.asarray(labels_np),
                                jnp.asarray(valid_np), priors)   # (2,N,P), (N,P)

        # ---- lane-dense (priors->lanes) + sublane-dense (batch->sublanes) ----
        # TODO(synk): the two transposes below are one extra HBM pass each; emit
        #             (C,N,P)/(2,N,P) directly upstream (or bf16 scores on v5e)
        #             to remove them when prior counts are large.
        scores2 = jnp.reshape(jnp.squeeze(scores),
                              (num, num_priors, self.num_classes))
        bbox_t = jnp.transpose(bbox_pred.astype(jnp.float32), (2, 0, 1))   # (2,N,P)
        scores_t = jnp.transpose(scores2.astype(jnp.float32), (2, 0, 1))   # (C,N,P)
        conft = conf_t.astype(jnp.int32)                                   # (N,P)

        stats = multibox_stats_pallas(
            bbox_t, loc_t, scores_t, conft,
            negpos_ratio=self.negpos_ratio, num_classes=self.num_classes)

        s = jnp.sum(stats, axis=0)                           # (n_stats,) batch totals
        N = s[1]                                             # total number of positives
        denom_n = jnp.maximum(N, 1.0)
        loss_l = s[0] / denom_n
        loss_c = s[2] / denom_n
        length = s[3]
        total_accuracy = s[4] / jnp.maximum(length, 1.0)

        def cls_acc(c):
            corr = s[5 + c]
            cnt = s[5 + self.num_classes + c]
            return jnp.where(cnt > 0, corr / jnp.maximum(cnt, 1.0), 0.0)

        back_accy = cls_acc(0)
        first_accy = cls_acc(1)
        second_accy = cls_acc(2)
        third_accy = cls_acc(3)
        fourth_accy = cls_acc(4)

        return (loss_l, loss_c, total_accuracy, back_accy, first_accy,
                second_accy, third_accy, fourth_accy)


if __name__ == "__main__":
    key = jax.random.PRNGKey(0)
    num, P, C = 2, 128, 5
    k1, k2 = jax.random.split(key)

    bbox_pred = 0.1 * jax.random.normal(k1, (num, P, 2), jnp.float32)
    scores = jax.random.normal(k2, (num, P, C), jnp.float32)

    # prior boxes: evenly spaced 1-D intervals of width 0.1 in [0, 1]
    centers = (jnp.arange(P, dtype=jnp.float32) + 0.5) / P
    half_w = 0.05
    boxes = jnp.stack([jnp.clip(centers - half_w, 0.0, 1.0),
                       jnp.clip(centers + half_w, 0.0, 1.0)], axis=1)[None]  # (1,P,2)

    targets = [
        {'gt_boxes': [[10.0, 30.0], [70.0, 95.0]], 'gt_label': [1, 3]},
        {'gt_boxes': [[5.0, 20.0], [40.0, 60.0], [100.0, 120.0]],
         'gt_label': [2, 4, 1]},
    ]

    criterion = MultiBoxLoss(num_classes=C, overlap_thresh=0.5, neg_pos=3)
    out = criterion.forward((bbox_pred, scores, boxes), targets)
    out = [jax.block_until_ready(jnp.asarray(o)) for o in out]
    print("KERNEL_OK")
</pallas_src>

<mosaic_0001>
module attributes {stable_mosaic.version = 11 : i64} {
  func.func @_multibox_stats_kernel(%arg0: i32, %arg1: memref<2x8x128xf32, #tpu.memory_space<vmem>>, %arg2: memref<2x8x128xf32, #tpu.memory_space<vmem>>, %arg3: memref<5x8x128xf32, #tpu.memory_space<vmem>>, %arg4: memref<8x128xi32, #tpu.memory_space<vmem>>, %arg5: memref<1x15xf32, #tpu.memory_space<smem>>) attributes {dimension_semantics = [#tpu.dimension_semantics<parallel>], iteration_bounds = array<i64: 1>, scalar_prefetch = 0 : i64, scratch_operands = 0 : i64, tpu.core_type = #tpu.core_type<tc>, window_params = [{transform_indices = @transform_0, window_bounds = array<i64: 2, 8, 128>}, {transform_indices = @transform_1, window_bounds = array<i64: 2, 8, 128>}, {transform_indices = @transform_2, window_bounds = array<i64: 5, 8, 128>}, {transform_indices = @transform_3, window_bounds = array<i64: 8, 128>}, {transform_indices = @transform_4, window_bounds = array<i64: 1, 15>}]} {
    %c0 = arith.constant 0 : index
    %c0_0 = arith.constant 0 : index
    %c0_1 = arith.constant 0 : index
    %0 = vector.load %arg1[%c0, %c0_0, %c0_1] : memref<2x8x128xf32, #tpu.memory_space<vmem>>, vector<2x8x128xf32>
    %c0_2 = arith.constant 0 : index
    %c0_3 = arith.constant 0 : index
    %c0_4 = arith.constant 0 : index
    %1 = vector.load %arg2[%c0_2, %c0_3, %c0_4] : memref<2x8x128xf32, #tpu.memory_space<vmem>>, vector<2x8x128xf32>
    %c0_5 = arith.constant 0 : index
    %c0_6 = arith.constant 0 : index
    %c0_7 = arith.constant 0 : index
    %2 = vector.load %arg3[%c0_5, %c0_6, %c0_7] : memref<5x8x128xf32, #tpu.memory_space<vmem>>, vector<5x8x128xf32>
    %c0_8 = arith.constant 0 : index
    %c0_9 = arith.constant 0 : index
    %3 = vector.load %arg4[%c0_8, %c0_9] : memref<8x128xi32, #tpu.memory_space<vmem>>, vector<8x128xi32>
    %c0_i32 = arith.constant 0 : i32
    %4 = vector.broadcast %c0_i32 : i32 to vector<8x128xi32>
    %5 = arith.cmpi sgt, %3, %4 : vector<8x128xi32>
    %6 = arith.extui %5 : vector<8x128xi1> to vector<8x128xi32>
    %7 = arith.sitofp %6 : vector<8x128xi32> to vector<8x128xf32>
    %8 = arith.subf %0, %1 : vector<2x8x128xf32>
    %9 = math.absf %8 : vector<2x8x128xf32>
    %cst = arith.constant 1.000000e+00 : f32
    %10 = vector.broadcast %cst : f32 to vector<2x8x128xf32>
    %11 = arith.cmpf olt, %9, %10 : vector<2x8x128xf32>
    %cst_10 = arith.constant 5.000000e-01 : f32
    %12 = vector.broadcast %cst_10 : f32 to vector<2x8x128xf32>
    %13 = arith.mulf %12, %8 : vector<2x8x128xf32>
    %14 = arith.mulf %13, %8 : vector<2x8x128xf32>
    %cst_11 = arith.constant 5.000000e-01 : f32
    %15 = vector.broadcast %cst_11 : f32 to vector<2x8x128xf32>
    %16 = arith.subf %9, %15 : vector<2x8x128xf32>
    %17 = arith.select %11, %14, %16 : vector<2x8x128xi1>, vector<2x8x128xf32>
    %18 = vector.extract_strided_slice %17 {offsets = [0, 0, 0], sizes = [1, 8, 128], strides = [1, 1, 1]} : vector<2x8x128xf32> to vector<1x8x128xf32>
    %19 = vector.shape_cast %18 : vector<1x8x128xf32> to vector<8x128xf32>
    %20 = vector.extract_strided_slice %17 {offsets = [1, 0, 0], sizes = [1, 8, 128], strides = [1, 1, 1]} : vector<2x8x128xf32> to vector<1x8x128xf32>
    %21 = vector.shape_cast %20 : vector<1x8x128xf32> to vector<8x128xf32>
    %22 = arith.addf %19, %21 : vector<8x128xf32>
    %23 = arith.mulf %22, %7 : vector<8x128xf32>
    %24 = vector.shape_cast %23 : vector<8x128xf32> to vector<1x8x128xf32>
    %cst_12 = arith.constant dense<0.000000e+00> : vector<1xf32>
    %25 = vector.multi_reduction <add>, %24, %cst_12 [1, 2] : vector<1x8x128xf32> to vector<1xf32>
    %26 = vector.shape_cast %25 : vector<1xf32> to vector<1x1x1xf32>
    %27 = vector.extract %26[0, 0, 0] : f32 from vector<1x1x1xf32>
    %c0_i32_13 = arith.constant 0 : i32
    %28 = vector.broadcast %c0_i32_13 : i32 to vector<8x128xi32>
    %29 = arith.cmpi eq, %3, %28 : vector<8x128xi32>
    %30 = arith.extui %29 : vector<8x128xi1> to vector<8x128xi32>
    %31 = arith.sitofp %30 : vector<8x128xi32> to vector<8x128xf32>
    %c1_i32 = arith.constant 1 : i32
    %32 = vector.broadcast %c1_i32 : i32 to vector<8x128xi32>
    %33 = arith.cmpi eq, %3, %32 : vector<8x128xi32>
    %34 = arith.extui %33 : vector<8x128xi1> to vector<8x128xi32>
    %35 = arith.sitofp %34 : vector<8x128xi32> to vector<8x128xf32>
    %c2_i32 = arith.constant 2 : i32
    %36 = vector.broadcast %c2_i32 : i32 to vector<8x128xi32>
    %37 = arith.cmpi eq, %3, %36 : vector<8x128xi32>
    %38 = arith.extui %37 : vector<8x128xi1> to vector<8x128xi32>
    %39 = arith.sitofp %38 : vector<8x128xi32> to vector<8x128xf32>
    %c3_i32 = arith.constant 3 : i32
    %40 = vector.broadcast %c3_i32 : i32 to vector<8x128xi32>
    %41 = arith.cmpi eq, %3, %40 : vector<8x128xi32>
    %42 = arith.extui %41 : vector<8x128xi1> to vector<8x128xi32>
    %43 = arith.sitofp %42 : vector<8x128xi32> to vector<8x128xf32>
    %c4_i32 = arith.constant 4 : i32
    %44 = vector.broadcast %c4_i32 : i32 to vector<8x128xi32>
    %45 = arith.cmpi eq, %3, %44 : vector<8x128xi32>
    %46 = arith.extui %45 : vector<8x128xi1> to vector<8x128xi32>
    %47 = arith.sitofp %46 : vector<8x128xi32> to vector<8x128xf32>
    %48 = vector.extract_strided_slice %2 {offsets = [0, 0, 0], sizes = [1, 8, 128], strides = [1, 1, 1]} : vector<5x8x128xf32> to vector<1x8x128xf32>
    %49 = vector.shape_cast %48 : vector<1x8x128xf32> to vector<8x128xf32>
    %50 = vector.extract_strided_slice %2 {offsets = [1, 0, 0], sizes = [1, 8, 128], strides = [1, 1, 1]} : vector<5x8x128xf32> to vector<1x8x128xf32>
    %51 = vector.shape_cast %50 : vector<1x8x128xf32> to vector<8x128xf32>
    %52 = arith.maximumf %49, %51 : vector<8x128xf32>
    %53 = vector.extract_strided_slice %2 {offsets = [2, 0, 0], sizes = [1, 8, 128], strides = [1, 1, 1]} : vector<5x8x128xf32> to vector<1x8x128xf32>
    %54 = vector.shape_cast %53 : vector<1x8x128xf32> to vector<8x128xf32>
    %55 = arith.maximumf %52, %54 : vector<8x128xf32>
    %56 = vector.extract_strided_slice %2 {offsets = [3, 0, 0], sizes = [1, 8, 128], strides = [1, 1, 1]} : vector<5x8x128xf32> to vector<1x8x128xf32>
    %57 = vector.shape_cast %56 : vector<1x8x128xf32> to vector<8x128xf32>
    %58 = arith.maximumf %55, %57 : vector<8x128xf32>
    %59 = vector.extract_strided_slice %2 {offsets = [4, 0, 0], sizes = [1, 8, 128], strides = [1, 1, 1]} : vector<5x8x128xf32> to vector<1x8x128xf32>
    %60 = vector.shape_cast %59 : vector<1x8x128xf32> to vector<8x128xf32>
    %61 = arith.maximumf %58, %60 : vector<8x128xf32>
    %cst_14 = arith.constant 0.000000e+00 : f32
    %62 = vector.broadcast %cst_14 : f32 to vector<8x128xf32>
    %cst_15 = arith.constant 0.000000e+00 : f32
    %63 = vector.broadcast %cst_15 : f32 to vector<8x128xf32>
    %c0_i32_16 = arith.constant 0 : i32
    %64 = vector.broadcast %c0_i32_16 : i32 to vector<8x128xi32>
    %65 = vector.extract_strided_slice %2 {offsets = [4, 0, 0], sizes = [1, 8, 128], strides = [1, 1, 1]} : vector<5x8x128xf32> to vector<1x8x128xf32>
    %66 = vector.shape_cast %65 : vector<1x8x128xf32> to vector<8x128xf32>
    %67 = arith.subf %66, %61 : vector<8x128xf32>
    %68 = math.exp %67 : vector<8x128xf32>
    %69 = arith.addf %62, %68 : vector<8x128xf32>
    %70 = arith.mulf %47, %66 : vector<8x128xf32>
    %71 = arith.addf %63, %70 : vector<8x128xf32>
    %72 = arith.cmpf oeq, %66, %61 : vector<8x128xf32>
    %c4_i32_17 = arith.constant 4 : i32
    %73 = vector.broadcast %c4_i32_17 : i32 to vector<8x128xi32>
    %74 = arith.select %72, %73, %64 : vector<8x128xi1>, vector<8x128xi32>
    %75 = vector.extract_strided_slice %2 {offsets = [3, 0, 0], sizes = [1, 8, 128], strides = [1, 1, 1]} : vector<5x8x128xf32> to vector<1x8x128xf32>
    %76 = vector.shape_cast %75 : vector<1x8x128xf32> to vector<8x128xf32>
    %77 = arith.subf %76, %61 : vector<8x128xf32>
    %78 = math.exp %77 : vector<8x128xf32>
    %79 = arith.addf %69, %78 : vector<8x128xf32>
    %80 = arith.mulf %43, %76 : vector<8x128xf32>
    %81 = arith.addf %71, %80 : vector<8x128xf32>
    %82 = arith.cmpf oeq, %76, %61 : vector<8x128xf32>
    %c3_i32_18 = arith.constant 3 : i32
    %83 = vector.broadcast %c3_i32_18 : i32 to vector<8x128xi32>
    %84 = arith.select %82, %83, %74 : vector<8x128xi1>, vector<8x128xi32>
    %85 = vector.extract_strided_slice %2 {offsets = [2, 0, 0], sizes = [1, 8, 128], strides = [1, 1, 1]} : vector<5x8x128xf32> to vector<1x8x128xf32>
    %86 = vector.shape_cast %85 : vector<1x8x128xf32> to vector<8x128xf32>
    %87 = arith.subf %86, %61 : vector<8x128xf32>
    %88 = math.exp %87 : vector<8x128xf32>
    %89 = arith.addf %79, %88 : vector<8x128xf32>
    %90 = arith.mulf %39, %86 : vector<8x128xf32>
    %91 = arith.addf %81, %90 : vector<8x128xf32>
    %92 = arith.cmpf oeq, %86, %61 : vector<8x128xf32>
    %c2_i32_19 = arith.constant 2 : i32
    %93 = vector.broadcast %c2_i32_19 : i32 to vector<8x128xi32>
    %94 = arith.select %92, %93, %84 : vector<8x128xi1>, vector<8x128xi32>
    %95 = vector.extract_strided_slice %2 {offsets = [1, 0, 0], sizes = [1, 8, 128], strides = [1, 1, 1]} : vector<5x8x128xf32> to vector<1x8x128xf32>
    %96 = vector.shape_cast %95 : vector<1x8x128xf32> to vector<8x128xf32>
    %97 = arith.subf %96, %61 : vector<8x128xf32>
    %98 = math.exp %97 : vector<8x128xf32>
    %99 = arith.addf %89, %98 : vector<8x128xf32>
    %100 = arith.mulf %35, %96 : vector<8x128xf32>
    %101 = arith.addf %91, %100 : vector<8x128xf32>
    %102 = arith.cmpf oeq, %96, %61 : vector<8x128xf32>
    %c1_i32_20 = arith.constant 1 : i32
    %103 = vector.broadcast %c1_i32_20 : i32 to vector<8x128xi32>
    %104 = arith.select %102, %103, %94 : vector<8x128xi1>, vector<8x128xi32>
    %105 = vector.extract_strided_slice %2 {offsets = [0, 0, 0], sizes = [1, 8, 128], strides = [1, 1, 1]} : vector<5x8x128xf32> to vector<1x8x128xf32>
    %106 = vector.shape_cast %105 : vector<1x8x128xf32> to vector<8x128xf32>
    %107 = arith.subf %106, %61 : vector<8x128xf32>
    %108 = math.exp %107 : vector<8x128xf32>
    %109 = arith.addf %99, %108 : vector<8x128xf32>
    %110 = arith.mulf %31, %106 : vector<8x128xf32>
    %111 = arith.addf %101, %110 : vector<8x128xf32>
    %112 = arith.cmpf oeq, %106, %61 : vector<8x128xf32>
    %c0_i32_21 = arith.constant 0 : i32
    %113 = vector.broadcast %c0_i32_21 : i32 to vector<8x128xi32>
    %114 = arith.select %112, %113, %104 : vector<8x128xi1>, vector<8x128xi32>
    %115 = math.log %109 : vector<8x128xf32>
    %116 = arith.addf %115, %61 : vector<8x128xf32>
    %117 = arith.subf %116, %111 : vector<8x128xf32>
    %cst_22 = arith.constant 0.000000e+00 : f32
    %118 = vector.broadcast %cst_22 : f32 to vector<8x128xf32>
    %119 = arith.select %5, %118, %117 : vector<8x128xi1>, vector<8x128xf32>
    %cst_23 = arith.constant 0.000000e+00 : f32
    %120 = vector.broadcast %cst_23 : f32 to vector<8x128xf32>
    %121 = arith.maximumf %119, %120 : vector<8x128xf32>
    %cst_24 = arith.constant dense<0.000000e+00> : vector<8xf32>
    %122 = vector.multi_reduction <add>, %7, %cst_24 [1] : vector<8x128xf32> to vector<8xf32>
    %123 = vector.shape_cast %122 : vector<8xf32> to vector<8x1xf32>
    %cst_25 = arith.constant 3.000000e+00 : f32
    %124 = vector.broadcast %cst_25 : f32 to vector<8x1xf32>
    %125 = arith.mulf %124, %123 : vector<8x1xf32>
    %cst_26 = arith.constant 1.270000e+02 : f32
    %126 = vector.broadcast %cst_26 : f32 to vector<8x1xf32>
    %127 = arith.minimumf %125, %126 : vector<8x1xf32>
    %cst_27 = arith.constant dense<0xFF800000> : vector<8xf32>
    %128 = vector.multi_reduction <maximumf>, %121, %cst_27 [1] : vector<8x128xf32> to vector<8xf32>
    %129 = vector.shape_cast %128 : vector<8xf32> to vector<8x1xf32>
    %cst_28 = arith.constant 1.000000e+00 : f32
    %130 = vector.broadcast %cst_28 : f32 to vector<8x1xf32>
    %131 = arith.addf %129, %130 : vector<8x1xf32>
    %cst_29 = arith.constant 0.000000e+00 : f32
    %132 = vector.broadcast %cst_29 : f32 to vector<8x1xf32>
    %c0_i32_30 = arith.constant 0 : i32
    %133 = arith.addf %132, %131 : vector<8x1xf32>
    %cst_31 = arith.constant 5.000000e-01 : f32
    %134 = vector.broadcast %cst_31 : f32 to vector<8x1xf32>
    %135 = arith.mulf %134, %133 : vector<8x1xf32>
    %136 = vector.broadcast %135 : vector<8x1xf32> to vector<8x128xf32>
    %137 = arith.cmpf oge, %121, %136 : vector<8x128xf32>
    %138 = arith.extui %137 : vector<8x128xi1> to vector<8x128xi32>
    %139 = arith.sitofp %138 : vector<8x128xi32> to vector<8x128xf32>
    %cst_32 = arith.constant dense<0.000000e+00> : vector<8xf32>
    %140 = vector.multi_reduction <add>, %139, %cst_32 [1] : vector<8x128xf32> to vector<8xf32>
    %141 = vector.shape_cast %140 : vector<8xf32> to vector<8x1xf32>
    %142 = arith.cmpf oge, %141, %127 : vector<8x1xf32>
    %143 = arith.select %142, %135, %132 : vector<8x1xi1>, vector<8x1xf32>
    %144 = arith.select %142, %131, %135 : vector<8x1xi1>, vector<8x1xf32>
    %c1_i32_33 = arith.constant 1 : i32
    %145 = arith.addf %143, %144 : vector<8x1xf32>
    %cst_34 = arith.constant 5.000000e-01 : f32
    %146 = vector.broadcast %cst_34 : f32 to vector<8x1xf32>
    %147 = arith.mulf %146, %145 : vector<8x1xf32>
    %148 = vector.broadcast %147 : vector<8x1xf32> to vector<8x128xf32>
    %149 = arith.cmpf oge, %121, %148 : vector<8x128xf32>
    %150 = arith.extui %149 : vector<8x128xi1> to vector<8x128xi32>
    %151 = arith.sitofp %150 : vector<8x128xi32> to vector<8x128xf32>
    %cst_35 = arith.constant dense<0.000000e+00> : vector<8xf32>
    %152 = vector.multi_reduction <add>, %151, %cst_35 [1] : vector<8x128xf32> to vector<8xf32>
    %153 = vector.shape_cast %152 : vector<8xf32> to vector<8x1xf32>
    %154 = arith.cmpf oge, %153, %127 : vector<8x1xf32>
    %155 = arith.select %154, %147, %143 : vector<8x1xi1>, vector<8x1xf32>
    %156 = arith.select %154, %144, %147 : vector<8x1xi1>, vector<8x1xf32>
    %c2_i32_36 = arith.constant 2 : i32
    %157 = arith.addf %155, %156 : vector<8x1xf32>
    %cst_37 = arith.constant 5.000000e-01 : f32
    %158 = vector.broadcast %cst_37 : f32 to vector<8x1xf32>
    %159 = arith.mulf %158, %157 : vector<8x1xf32>
    %160 = vector.broadcast %159 : vector<8x1xf32> to vector<8x128xf32>
    %161 = arith.cmpf oge, %121, %160 : vector<8x128xf32>
    %162 = arith.extui %161 : vector<8x128xi1> to vector<8x128xi32>
    %163 = arith.sitofp %162 : vector<8x128xi32> to vector<8x128xf32>
    %cst_38 = arith.constant dense<0.000000e+00> : vector<8xf32>
    %164 = vector.multi_reduction <add>, %163, %cst_38 [1] : vector<8x128xf32> to vector<8xf32>
    %165 = vector.shape_cast %164 : vector<8xf32> to vector<8x1xf32>
    %166 = arith.cmpf oge, %165, %127 : vector<8x1xf32>
    %167 = arith.select %166, %159, %155 : vector<8x1xi1>, vector<8x1xf32>
    %168 = arith.select %166, %156, %159 : vector<8x1xi1>, vector<8x1xf32>
    %c3_i32_39 = arith.constant 3 : i32
    %169 = arith.addf %167, %168 : vector<8x1xf32>
    %cst_40 = arith.constant 5.000000e-01 : f32
    %170 = vector.broadcast %cst_40 : f32 to vector<8x1xf32>
    %171 = arith.mulf %170, %169 : vector<8x1xf32>
    %172 = vector.broadcast %171 : vector<8x1xf32> to vector<8x128xf32>
    %173 = arith.cmpf oge, %121, %172 : vector<8x128xf32>
    %174 = arith.extui %173 : vector<8x128xi1> to vector<8x128xi32>
    %175 = arith.sitofp %174 : vector<8x128xi32> to vector<8x128xf32>
    %cst_41 = arith.constant dense<0.000000e+00> : vector<8xf32>
    %176 = vector.multi_reduction <add>, %175, %cst_41 [1] : vector<8x128xf32> to vector<8xf32>
    %177 = vector.shape_cast %176 : vector<8xf32> to vector<8x1xf32>
    %178 = arith.cmpf oge, %177, %127 : vector<8x1xf32>
    %179 = arith.select %178, %171, %167 : vector<8x1xi1>, vector<8x1xf32>
    %180 = arith.select %178, %168, %171 : vector<8x1xi1>, vector<8x1xf32>
    %c4_i32_42 = arith.constant 4 : i32
    %181 = arith.addf %179, %180 : vector<8x1xf32>
    %cst_43 = arith.constant 5.000000e-01 : f32
    %182 = vector.broadcast %cst_43 : f32 to vector<8x1xf32>
    %183 = arith.mulf %182, %181 : vector<8x1xf32>
    %184 = vector.broadcast %183 : vector<8x1xf32> to vector<8x128xf32>
    %185 = arith.cmpf oge, %121, %184 : vector<8x128xf32>
    %186 = arith.extui %185 : vector<8x128xi1> to vector<8x128xi32>
    %187 = arith.sitofp %186 : vector<8x128xi32> to vector<8x128xf32>
    %cst_44 = arith.constant dense<0.000000e+00> : vector<8xf32>
    %188 = vector.multi_reduction <add>, %187, %cst_44 [1] : vector<8x128xf32> to vector<8xf32>
    %189 = vector.shape_cast %188 : vector<8xf32> to vector<8x1xf32>
    %190 = arith.cmpf oge, %189, %127 : vector<8x1xf32>
    %191 = arith.select %190, %183, %179 : vector<8x1xi1>, vector<8x1xf32>
    %192 = arith.select %190, %180, %183 : vector<8x1xi1>, vector<8x1xf32>
    %c5_i32 = arith.constant 5 : i32
    %193 = arith.addf %191, %192 : vector<8x1xf32>
    %cst_45 = arith.constant 5.000000e-01 : f32
    %194 = vector.broadcast %cst_45 : f32 to vector<8x1xf32>
    %195 = arith.mulf %194, %193 : vector<8x1xf32>
    %196 = vector.broadcast %195 : vector<8x1xf32> to vector<8x128xf32>
    %197 = arith.cmpf oge, %121, %196 : vector<8x128xf32>
    %198 = arith.extui %197 : vector<8x128xi1> to vector<8x128xi32>
    %199 = arith.sitofp %198 : vector<8x128xi32> to vector<8x128xf32>
    %cst_46 = arith.constant dense<0.000000e+00> : vector<8xf32>
    %200 = vector.multi_reduction <add>, %199, %cst_46 [1] : vector<8x128xf32> to vector<8xf32>
    %201 = vector.shape_cast %200 : vector<8xf32> to vector<8x1xf32>
    %202 = arith.cmpf oge, %201, %127 : vector<8x1xf32>
    %203 = arith.select %202, %195, %191 : vector<8x1xi1>, vector<8x1xf32>
    %204 = arith.select %202, %192, %195 : vector<8x1xi1>, vector<8x1xf32>
    %c6_i32 = arith.constant 6 : i32
    %205 = arith.addf %203, %204 : vector<8x1xf32>
    %cst_47 = arith.constant 5.000000e-01 : f32
    %206 = vector.broadcast %cst_47 : f32 to vector<8x1xf32>
    %207 = arith.mulf %206, %205 : vector<8x1xf32>
    %208 = vector.broadcast %207 : vector<8x1xf32> to vector<8x128xf32>
    %209 = arith.cmpf oge, %121, %208 : vector<8x128xf32>
    %210 = arith.extui %209 : vector<8x128xi1> to vector<8x128xi32>
    %211 = arith.sitofp %210 : vector<8x128xi32> to vector<8x128xf32>
    %cst_48 = arith.constant dense<0.000000e+00> : vector<8xf32>
    %212 = vector.multi_reduction <add>, %211, %cst_48 [1] : vector<8x128xf32> to vector<8xf32>
    %213 = vector.shape_cast %212 : vector<8xf32> to vector<8x1xf32>
    %214 = arith.cmpf oge, %213, %127 : vector<8x1xf32>
    %215 = arith.select %214, %207, %203 : vector<8x1xi1>, vector<8x1xf32>
    %216 = arith.select %214, %204, %207 : vector<8x1xi1>, vector<8x1xf32>
    %c7_i32 = arith.constant 7 : i32
    %217 = arith.addf %215, %216 : vector<8x1xf32>
    %cst_49 = arith.constant 5.000000e-01 : f32
    %218 = vector.broadcast %cst_49 : f32 to vector<8x1xf32>
    %219 = arith.mulf %218, %217 : vector<8x1xf32>
    %220 = vector.broadcast %219 : vector<8x1xf32> to vector<8x128xf32>
    %221 = arith.cmpf oge, %121, %220 : vector<8x128xf32>
    %222 = arith.extui %221 : vector<8x128xi1> to vector<8x128xi32>
    %223 = arith.sitofp %222 : vector<8x128xi32> to vector<8x128xf32>
    %cst_50 = arith.constant dense<0.000000e+00> : vector<8xf32>
    %224 = vector.multi_reduction <add>, %223, %cst_50 [1] : vector<8x128xf32> to vector<8xf32>
    %225 = vector.shape_cast %224 : vector<8xf32> to vector<8x1xf32>
    %226 = arith.cmpf oge, %225, %127 : vector<8x1xf32>
    %227 = arith.select %226, %219, %215 : vector<8x1xi1>, vector<8x1xf32>
    %228 = arith.select %226, %216, %219 : vector<8x1xi1>, vector<8x1xf32>
    %c8_i32 = arith.constant 8 : i32
    %229 = arith.addf %227, %228 : vector<8x1xf32>
    %cst_51 = arith.constant 5.000000e-01 : f32
    %230 = vector.broadcast %cst_51 : f32 to vector<8x1xf32>
    %231 = arith.mulf %230, %229 : vector<8x1xf32>
    %232 = vector.broadcast %231 : vector<8x1xf32> to vector<8x128xf32>
    %233 = arith.cmpf oge, %121, %232 : vector<8x128xf32>
    %234 = arith.extui %233 : vector<8x128xi1> to vector<8x128xi32>
    %235 = arith.sitofp %234 : vector<8x128xi32> to vector<8x128xf32>
    %cst_52 = arith.constant dense<0.000000e+00> : vector<8xf32>
    %236 = vector.multi_reduction <add>, %235, %cst_52 [1] : vector<8x128xf32> to vector<8xf32>
    %237 = vector.shape_cast %236 : vector<8xf32> to vector<8x1xf32>
    %238 = arith.cmpf oge, %237, %127 : vector<8x1xf32>
    %239 = arith.select %238, %231, %227 : vector<8x1xi1>, vector<8x1xf32>
    %240 = arith.select %238, %228, %231 : vector<8x1xi1>, vector<8x1xf32>
    %c9_i32 = arith.constant 9 : i32
    %241 = arith.addf %239, %240 : vector<8x1xf32>
    %cst_53 = arith.constant 5.000000e-01 : f32
    %242 = vector.broadcast %cst_53 : f32 to vector<8x1xf32>
    %243 = arith.mulf %242, %241 : vector<8x1xf32>
    %244 = vector.broadcast %243 : vector<8x1xf32> to vector<8x128xf32>
    %245 = arith.cmpf oge, %121, %244 : vector<8x128xf32>
    %246 = arith.extui %245 : vector<8x128xi1> to vector<8x128xi32>
    %247 = arith.sitofp %246 : vector<8x128xi32> to vector<8x128xf32>
    %cst_54 = arith.constant dense<0.000000e+00> : vector<8xf32>
    %248 = vector.multi_reduction <add>, %247, %cst_54 [1] : vector<8x128xf32> to vector<8xf32>
    %249 = vector.shape_cast %248 : vector<8xf32> to vector<8x1xf32>
    %250 = arith.cmpf oge, %249, %127 : vector<8x1xf32>
    %251 = arith.select %250, %243, %239 : vector<8x1xi1>, vector<8x1xf32>
    %252 = arith.select %250, %240, %243 : vector<8x1xi1>, vector<8x1xf32>
    %c10_i32 = arith.constant 10 : i32
    %253 = arith.addf %251, %252 : vector<8x1xf32>
    %cst_55 = arith.constant 5.000000e-01 : f32
    %254 = vector.broadcast %cst_55 : f32 to vector<8x1xf32>
    %255 = arith.mulf %254, %253 : vector<8x1xf32>
    %256 = vector.broadcast %255 : vector<8x1xf32> to vector<8x128xf32>
    %257 = arith.cmpf oge, %121, %256 : vector<8x128xf32>
    %258 = arith.extui %257 : vector<8x128xi1> to vector<8x128xi32>
    %259 = arith.sitofp %258 : vector<8x128xi32> to vector<8x128xf32>
    %cst_56 = arith.constant dense<0.000000e+00> : vector<8xf32>
    %260 = vector.multi_reduction <add>, %259, %cst_56 [1] : vector<8x128xf32> to vector<8xf32>
    %261 = vector.shape_cast %260 : vector<8xf32> to vector<8x1xf32>
    %262 = arith.cmpf oge, %261, %127 : vector<8x1xf32>
    %263 = arith.select %262, %255, %251 : vector<8x1xi1>, vector<8x1xf32>
    %264 = arith.select %262, %252, %255 : vector<8x1xi1>, vector<8x1xf32>
    %c11_i32 = arith.constant 11 : i32
    %265 = arith.addf %263, %264 : vector<8x1xf32>
    %cst_57 = arith.constant 5.000000e-01 : f32
    %266 = vector.broadcast %cst_57 : f32 to vector<8x1xf32>
    %267 = arith.mulf %266, %265 : vector<8x1xf32>
    %268 = vector.broadcast %267 : vector<8x1xf32> to vector<8x128xf32>
    %269 = arith.cmpf oge, %121, %268 : vector<8x128xf32>
    %270 = arith.extui %269 : vector<8x128xi1> to vector<8x128xi32>
    %271 = arith.sitofp %270 : vector<8x128xi32> to vector<8x128xf32>
    %cst_58 = arith.constant dense<0.000000e+00> : vector<8xf32>
    %272 = vector.multi_reduction <add>, %271, %cst_58 [1] : vector<8x128xf32> to vector<8xf32>
    %273 = vector.shape_cast %272 : vector<8xf32> to vector<8x1xf32>
    %274 = arith.cmpf oge, %273, %127 : vector<8x1xf32>
    %275 = arith.select %274, %267, %263 : vector<8x1xi1>, vector<8x1xf32>
    %276 = arith.select %274, %264, %267 : vector<8x1xi1>, vector<8x1xf32>
    %c12_i32 = arith.constant 12 : i32
    %277 = arith.addf %275, %276 : vector<8x1xf32>
    %cst_59 = arith.constant 5.000000e-01 : f32
    %278 = vector.broadcast %cst_59 : f32 to vector<8x1xf32>
    %279 = arith.mulf %278, %277 : vector<8x1xf32>
    %280 = vector.broadcast %279 : vector<8x1xf32> to vector<8x128xf32>
    %281 = arith.cmpf oge, %121, %280 : vector<8x128xf32>
    %282 = arith.extui %281 : vector<8x128xi1> to vector<8x128xi32>
    %283 = arith.sitofp %282 : vector<8x128xi32> to vector<8x128xf32>
    %cst_60 = arith.constant dense<0.000000e+00> : vector<8xf32>
    %284 = vector.multi_reduction <add>, %283, %cst_60 [1] : vector<8x128xf32> to vector<8xf32>
    %285 = vector.shape_cast %284 : vector<8xf32> to vector<8x1xf32>
    %286 = arith.cmpf oge, %285, %127 : vector<8x1xf32>
    %287 = arith.select %286, %279, %275 : vector<8x1xi1>, vector<8x1xf32>
    %288 = arith.select %286, %276, %279 : vector<8x1xi1>, vector<8x1xf32>
    %c13_i32 = arith.constant 13 : i32
    %289 = arith.addf %287, %288 : vector<8x1xf32>
    %cst_61 = arith.constant 5.000000e-01 : f32
    %290 = vector.broadcast %cst_61 : f32 to vector<8x1xf32>
    %291 = arith.mulf %290, %289 : vector<8x1xf32>
    %292 = vector.broadcast %291 : vector<8x1xf32> to vector<8x128xf32>
    %293 = arith.cmpf oge, %121, %292 : vector<8x128xf32>
    %294 = arith.extui %293 : vector<8x128xi1> to vector<8x128xi32>
    %295 = arith.sitofp %294 : vector<8x128xi32> to vector<8x128xf32>
    %cst_62 = arith.constant dense<0.000000e+00> : vector<8xf32>
    %296 = vector.multi_reduction <add>, %295, %cst_62 [1] : vector<8x128xf32> to vector<8xf32>
    %297 = vector.shape_cast %296 : vector<8xf32> to vector<8x1xf32>
    %298 = arith.cmpf oge, %297, %127 : vector<8x1xf32>
    %299 = arith.select %298, %291, %287 : vector<8x1xi1>, vector<8x1xf32>
    %300 = arith.select %298, %288, %291 : vector<8x1xi1>, vector<8x1xf32>
    %c14_i32 = arith.constant 14 : i32
    %301 = arith.addf %299, %300 : vector<8x1xf32>
    %cst_63 = arith.constant 5.000000e-01 : f32
    %302 = vector.broadcast %cst_63 : f32 to vector<8x1xf32>
    %303 = arith.mulf %302, %301 : vector<8x1xf32>
    %304 = vector.broadcast %303 : vector<8x1xf32> to vector<8x128xf32>
    %305 = arith.cmpf oge, %121, %304 : vector<8x128xf32>
    %306 = arith.extui %305 : vector<8x128xi1> to vector<8x128xi32>
    %307 = arith.sitofp %306 : vector<8x128xi32> to vector<8x128xf32>
    %cst_64 = arith.constant dense<0.000000e+00> : vector<8xf32>
    %308 = vector.multi_reduction <add>, %307, %cst_64 [1] : vector<8x128xf32> to vector<8xf32>
    %309 = vector.shape_cast %308 : vector<8xf32> to vector<8x1xf32>
    %310 = arith.cmpf oge, %309, %127 : vector<8x1xf32>
    %311 = arith.select %310, %303, %299 : vector<8x1xi1>, vector<8x1xf32>
    %312 = arith.select %310, %300, %303 : vector<8x1xi1>, vector<8x1xf32>
    %c15_i32 = arith.constant 15 : i32
    %313 = arith.addf %311, %312 : vector<8x1xf32>
    %cst_65 = arith.constant 5.000000e-01 : f32
    %314 = vector.broadcast %cst_65 : f32 to vector<8x1xf32>
    %315 = arith.mulf %314, %313 : vector<8x1xf32>
    %316 = vector.broadcast %315 : vector<8x1xf32> to vector<8x128xf32>
    %317 = arith.cmpf oge, %121, %316 : vector<8x128xf32>
    %318 = arith.extui %317 : vector<8x128xi1> to vector<8x128xi32>
    %319 = arith.sitofp %318 : vector<8x128xi32> to vector<8x128xf32>
    %cst_66 = arith.constant dense<0.000000e+00> : vector<8xf32>
    %320 = vector.multi_reduction <add>, %319, %cst_66 [1] : vector<8x128xf32> to vector<8xf32>
    %321 = vector.shape_cast %320 : vector<8xf32> to vector<8x1xf32>
    %322 = arith.cmpf oge, %321, %127 : vector<8x1xf32>
    %323 = arith.select %322, %315, %311 : vector<8x1xi1>, vector<8x1xf32>
    %324 = arith.select %322, %312, %315 : vector<8x1xi1>, vector<8x1xf32>
    %c16_i32 = arith.constant 16 : i32
    %325 = arith.addf %323, %324 : vector<8x1xf32>
    %cst_67 = arith.constant 5.000000e-01 : f32
    %326 = vector.broadcast %cst_67 : f32 to vector<8x1xf32>
    %327 = arith.mulf %326, %325 : vector<8x1xf32>
    %328 = vector.broadcast %327 : vector<8x1xf32> to vector<8x128xf32>
    %329 = arith.cmpf oge, %121, %328 : vector<8x128xf32>
    %330 = arith.extui %329 : vector<8x128xi1> to vector<8x128xi32>
    %331 = arith.sitofp %330 : vector<8x128xi32> to vector<8x128xf32>
    %cst_68 = arith.constant dense<0.000000e+00> : vector<8xf32>
    %332 = vector.multi_reduction <add>, %331, %cst_68 [1] : vector<8x128xf32> to vector<8xf32>
    %333 = vector.shape_cast %332 : vector<8xf32> to vector<8x1xf32>
    %334 = arith.cmpf oge, %333, %127 : vector<8x1xf32>
    %335 = arith.select %334, %327, %323 : vector<8x1xi1>, vector<8x1xf32>
    %336 = arith.select %334, %324, %327 : vector<8x1xi1>, vector<8x1xf32>
    %c17_i32 = arith.constant 17 : i32
    %337 = arith.addf %335, %336 : vector<8x1xf32>
    %cst_69 = arith.constant 5.000000e-01 : f32
    %338 = vector.broadcast %cst_69 : f32 to vector<8x1xf32>
    %339 = arith.mulf %338, %337 : vector<8x1xf32>
    %340 = vector.broadcast %339 : vector<8x1xf32> to vector<8x128xf32>
    %341 = arith.cmpf oge, %121, %340 : vector<8x128xf32>
    %342 = arith.extui %341 : vector<8x128xi1> to vector<8x128xi32>
    %343 = arith.sitofp %342 : vector<8x128xi32> to vector<8x128xf32>
    %cst_70 = arith.constant dense<0.000000e+00> : vector<8xf32>
    %344 = vector.multi_reduction <add>, %343, %cst_70 [1] : vector<8x128xf32> to vector<8xf32>
    %345 = vector.shape_cast %344 : vector<8xf32> to vector<8x1xf32>
    %346 = arith.cmpf oge, %345, %127 : vector<8x1xf32>
    %347 = arith.select %346, %339, %335 : vector<8x1xi1>, vector<8x1xf32>
    %348 = arith.select %346, %336, %339 : vector<8x1xi1>, vector<8x1xf32>
    %c18_i32 = arith.constant 18 : i32
    %349 = arith.addf %347, %348 : vector<8x1xf32>
    %cst_71 = arith.constant 5.000000e-01 : f32
    %350 = vector.broadcast %cst_71 : f32 to vector<8x1xf32>
    %351 = arith.mulf %350, %349 : vector<8x1xf32>
    %352 = vector.broadcast %351 : vector<8x1xf32> to vector<8x128xf32>
    %353 = arith.cmpf oge, %121, %352 : vector<8x128xf32>
    %354 = arith.extui %353 : vector<8x128xi1> to vector<8x128xi32>
    %355 = arith.sitofp %354 : vector<8x128xi32> to vector<8x128xf32>
    %cst_72 = arith.constant dense<0.000000e+00> : vector<8xf32>
    %356 = vector.multi_reduction <add>, %355, %cst_72 [1] : vector<8x128xf32> to vector<8xf32>
    %357 = vector.shape_cast %356 : vector<8xf32> to vector<8x1xf32>
    %358 = arith.cmpf oge, %357, %127 : vector<8x1xf32>
    %359 = arith.select %358, %351, %347 : vector<8x1xi1>, vector<8x1xf32>
    %360 = arith.select %358, %348, %351 : vector<8x1xi1>, vector<8x1xf32>
    %c19_i32 = arith.constant 19 : i32
    %361 = arith.addf %359, %360 : vector<8x1xf32>
    %cst_73 = arith.constant 5.000000e-01 : f32
    %362 = vector.broadcast %cst_73 : f32 to vector<8x1xf32>
    %363 = arith.mulf %362, %361 : vector<8x1xf32>
    %364 = vector.broadcast %363 : vector<8x1xf32> to vector<8x128xf32>
    %365 = arith.cmpf oge, %121, %364 : vector<8x128xf32>
    %366 = arith.extui %365 : vector<8x128xi1> to vector<8x128xi32>
    %367 = arith.sitofp %366 : vector<8x128xi32> to vector<8x128xf32>
    %cst_74 = arith.constant dense<0.000000e+00> : vector<8xf32>
    %368 = vector.multi_reduction <add>, %367, %cst_74 [1] : vector<8x128xf32> to vector<8xf32>
    %369 = vector.shape_cast %368 : vector<8xf32> to vector<8x1xf32>
    %370 = arith.cmpf oge, %369, %127 : vector<8x1xf32>
    %371 = arith.select %370, %363, %359 : vector<8x1xi1>, vector<8x1xf32>
    %372 = arith.select %370, %360, %363 : vector<8x1xi1>, vector<8x1xf32>
    %373 = vector.broadcast %371 : vector<8x1xf32> to vector<8x128xf32>
    %374 = arith.cmpf oge, %121, %373 : vector<8x128xf32>
    %375 = arith.ori %5, %374 : vector<8x128xi1>
    %376 = arith.extui %375 : vector<8x128xi1> to vector<8x128xi32>
    %377 = arith.sitofp %376 : vector<8x128xi32> to vector<8x128xf32>
    %378 = arith.cmpi eq, %114, %3 : vector<8x128xi32>
    %379 = arith.extui %378 : vector<8x128xi1> to vector<8x128xi32>
    %380 = arith.sitofp %379 : vector<8x128xi32> to vector<8x128xf32>
    %381 = arith.mulf %380, %377 : vector<8x128xf32>
    %c0_75 = arith.constant 0 : index
    %c0_76 = arith.constant 0 : index
    %382 = memref.load %arg5[%c0_75, %c0_76] : memref<1x15xf32, #tpu.memory_space<smem>>
    memref.store %27, %arg5[%c0_75, %c0_76] : memref<1x15xf32, #tpu.memory_space<smem>>
    %383 = vector.shape_cast %7 : vector<8x128xf32> to vector<1x8x128xf32>
    %cst_77 = arith.constant dense<0.000000e+00> : vector<1xf32>
    %384 = vector.multi_reduction <add>, %383, %cst_77 [1, 2] : vector<1x8x128xf32> to vector<1xf32>
    %385 = vector.shape_cast %384 : vector<1xf32> to vector<1x1x1xf32>
    %386 = vector.extract %385[0, 0, 0] : f32 from vector<1x1x1xf32>
    %c0_78 = arith.constant 0 : index
    %c1 = arith.constant 1 : index
    %387 = memref.load %arg5[%c0_78, %c1] : memref<1x15xf32, #tpu.memory_space<smem>>
    memref.store %386, %arg5[%c0_78, %c1] : memref<1x15xf32, #tpu.memory_space<smem>>
    %388 = arith.mulf %117, %377 : vector<8x128xf32>
    %389 = vector.shape_cast %388 : vector<8x128xf32> to vector<1x8x128xf32>
    %cst_79 = arith.constant dense<0.000000e+00> : vector<1xf32>
    %390 = vector.multi_reduction <add>, %389, %cst_79 [1, 2] : vector<1x8x128xf32> to vector<1xf32>
    %391 = vector.shape_cast %390 : vector<1xf32> to vector<1x1x1xf32>
    %392 = vector.extract %391[0, 0, 0] : f32 from vector<1x1x1xf32>
    %c0_80 = arith.constant 0 : index
    %c2 = arith.constant 2 : index
    %393 = memref.load %arg5[%c0_80, %c2] : memref<1x15xf32, #tpu.memory_space<smem>>
    memref.store %392, %arg5[%c0_80, %c2] : memref<1x15xf32, #tpu.memory_space<smem>>
    %394 = vector.shape_cast %377 : vector<8x128xf32> to vector<1x8x128xf32>
    %cst_81 = arith.constant dense<0.000000e+00> : vector<1xf32>
    %395 = vector.multi_reduction <add>, %394, %cst_81 [1, 2] : vector<1x8x128xf32> to vector<1xf32>
    %396 = vector.shape_cast %395 : vector<1xf32> to vector<1x1x1xf32>
    %397 = vector.extract %396[0, 0, 0] : f32 from vector<1x1x1xf32>
    %c0_82 = arith.constant 0 : index
    %c3 = arith.constant 3 : index
    %398 = memref.load %arg5[%c0_82, %c3] : memref<1x15xf32, #tpu.memory_space<smem>>
    memref.store %397, %arg5[%c0_82, %c3] : memref<1x15xf32, #tpu.memory_space<smem>>
    %399 = vector.shape_cast %381 : vector<8x128xf32> to vector<1x8x128xf32>
    %cst_83 = arith.constant dense<0.000000e+00> : vector<1xf32>
    %400 = vector.multi_reduction <add>, %399, %cst_83 [1, 2] : vector<1x8x128xf32> to vector<1xf32>
    %401 = vector.shape_cast %400 : vector<1xf32> to vector<1x1x1xf32>
    %402 = vector.extract %401[0, 0, 0] : f32 from vector<1x1x1xf32>
    %c0_84 = arith.constant 0 : index
    %c4 = arith.constant 4 : index
    %403 = memref.load %arg5[%c0_84, %c4] : memref<1x15xf32, #tpu.memory_space<smem>>
    memref.store %402, %arg5[%c0_84, %c4] : memref<1x15xf32, #tpu.memory_space<smem>>
    %404 = arith.mulf %31, %381 : vector<8x128xf32>
    %405 = vector.shape_cast %404 : vector<8x128xf32> to vector<1x8x128xf32>
    %cst_85 = arith.constant dense<0.000000e+00> : vector<1xf32>
    %406 = vector.multi_reduction <add>, %405, %cst_85 [1, 2] : vector<1x8x128xf32> to vector<1xf32>
    %407 = vector.shape_cast %406 : vector<1xf32> to vector<1x1x1xf32>
    %408 = vector.extract %407[0, 0, 0] : f32 from vector<1x1x1xf32>
    %c0_86 = arith.constant 0 : index
    %c5 = arith.constant 5 : index
    %409 = memref.load %arg5[%c0_86, %c5] : memref<1x15xf32, #tpu.memory_space<smem>>
    memref.store %408, %arg5[%c0_86, %c5] : memref<1x15xf32, #tpu.memory_space<smem>>
    %410 = arith.mulf %31, %377 : vector<8x128xf32>
    %411 = vector.shape_cast %410 : vector<8x128xf32> to vector<1x8x128xf32>
    %cst_87 = arith.constant dense<0.000000e+00> : vector<1xf32>
    %412 = vector.multi_reduction <add>, %411, %cst_87 [1, 2] : vector<1x8x128xf32> to vector<1xf32>
    %413 = vector.shape_cast %412 : vector<1xf32> to vector<1x1x1xf32>
    %414 = vector.extract %413[0, 0, 0] : f32 from vector<1x1x1xf32>
    %c0_88 = arith.constant 0 : index
    %c10 = arith.constant 10 : index
    %415 = memref.load %arg5[%c0_88, %c10] : memref<1x15xf32, #tpu.memory_space<smem>>
    memref.store %414, %arg5[%c0_88, %c10] : memref<1x15xf32, #tpu.memory_space<smem>>
    %416 = arith.mulf %35, %381 : vector<8x128xf32>
    %417 = vector.shape_cast %416 : vector<8x128xf32> to vector<1x8x128xf32>
    %cst_89 = arith.constant dense<0.000000e+00> : vector<1xf32>
    %418 = vector.multi_reduction <add>, %417, %cst_89 [1, 2] : vector<1x8x128xf32> to vector<1xf32>
    %419 = vector.shape_cast %418 : vector<1xf32> to vector<1x1x1xf32>
    %420 = vector.extract %419[0, 0, 0] : f32 from vector<1x1x1xf32>
    %c0_90 = arith.constant 0 : index
    %c6 = arith.constant 6 : index
    %421 = memref.load %arg5[%c0_90, %c6] : memref<1x15xf32, #tpu.memory_space<smem>>
    memref.store %420, %arg5[%c0_90, %c6] : memref<1x15xf32, #tpu.memory_space<smem>>
    %422 = arith.mulf %35, %377 : vector<8x128xf32>
    %423 = vector.shape_cast %422 : vector<8x128xf32> to vector<1x8x128xf32>
    %cst_91 = arith.constant dense<0.000000e+00> : vector<1xf32>
    %424 = vector.multi_reduction <add>, %423, %cst_91 [1, 2] : vector<1x8x128xf32> to vector<1xf32>
    %425 = vector.shape_cast %424 : vector<1xf32> to vector<1x1x1xf32>
    %426 = vector.extract %425[0, 0, 0] : f32 from vector<1x1x1xf32>
    %c0_92 = arith.constant 0 : index
    %c11 = arith.constant 11 : index
    %427 = memref.load %arg5[%c0_92, %c11] : memref<1x15xf32, #tpu.memory_space<smem>>
    memref.store %426, %arg5[%c0_92, %c11] : memref<1x15xf32, #tpu.memory_space<smem>>
    %428 = arith.mulf %39, %381 : vector<8x128xf32>
    %429 = vector.shape_cast %428 : vector<8x128xf32> to vector<1x8x128xf32>
    %cst_93 = arith.constant dense<0.000000e+00> : vector<1xf32>
    %430 = vector.multi_reduction <add>, %429, %cst_93 [1, 2] : vector<1x8x128xf32> to vector<1xf32>
    %431 = vector.shape_cast %430 : vector<1xf32> to vector<1x1x1xf32>
    %432 = vector.extract %431[0, 0, 0] : f32 from vector<1x1x1xf32>
    %c0_94 = arith.constant 0 : index
    %c7 = arith.constant 7 : index
    %433 = memref.load %arg5[%c0_94, %c7] : memref<1x15xf32, #tpu.memory_space<smem>>
    memref.store %432, %arg5[%c0_94, %c7] : memref<1x15xf32, #tpu.memory_space<smem>>
    %434 = arith.mulf %39, %377 : vector<8x128xf32>
    %435 = vector.shape_cast %434 : vector<8x128xf32> to vector<1x8x128xf32>
    %cst_95 = arith.constant dense<0.000000e+00> : vector<1xf32>
    %436 = vector.multi_reduction <add>, %435, %cst_95 [1, 2] : vector<1x8x128xf32> to vector<1xf32>
    %437 = vector.shape_cast %436 : vector<1xf32> to vector<1x1x1xf32>
    %438 = vector.extract %437[0, 0, 0] : f32 from vector<1x1x1xf32>
    %c0_96 = arith.constant 0 : index
    %c12 = arith.constant 12 : index
    %439 = memref.load %arg5[%c0_96, %c12] : memref<1x15xf32, #tpu.memory_space<smem>>
    memref.store %438, %arg5[%c0_96, %c12] : memref<1x15xf32, #tpu.memory_space<smem>>
    %440 = arith.mulf %43, %381 : vector<8x128xf32>
    %441 = vector.shape_cast %440 : vector<8x128xf32> to vector<1x8x128xf32>
    %cst_97 = arith.constant dense<0.000000e+00> : vector<1xf32>
    %442 = vector.multi_reduction <add>, %441, %cst_97 [1, 2] : vector<1x8x128xf32> to vector<1xf32>
    %443 = vector.shape_cast %442 : vector<1xf32> to vector<1x1x1xf32>
    %444 = vector.extract %443[0, 0, 0] : f32 from vector<1x1x1xf32>
    %c0_98 = arith.constant 0 : index
    %c8 = arith.constant 8 : index
    %445 = memref.load %arg5[%c0_98, %c8] : memref<1x15xf32, #tpu.memory_space<smem>>
    memref.store %444, %arg5[%c0_98, %c8] : memref<1x15xf32, #tpu.memory_space<smem>>
    %446 = arith.mulf %43, %377 : vector<8x128xf32>
    %447 = vector.shape_cast %446 : vector<8x128xf32> to vector<1x8x128xf32>
    %cst_99 = arith.constant dense<0.000000e+00> : vector<1xf32>
    %448 = vector.multi_reduction <add>, %447, %cst_99 [1, 2] : vector<1x8x128xf32> to vector<1xf32>
    %449 = vector.shape_cast %448 : vector<1xf32> to vector<1x1x1xf32>
    %450 = vector.extract %449[0, 0, 0] : f32 from vector<1x1x1xf32>
    %c0_100 = arith.constant 0 : index
    %c13 = arith.constant 13 : index
    %451 = memref.load %arg5[%c0_100, %c13] : memref<1x15xf32, #tpu.memory_space<smem>>
    memref.store %450, %arg5[%c0_100, %c13] : memref<1x15xf32, #tpu.memory_space<smem>>
    %452 = arith.mulf %47, %381 : vector<8x128xf32>
    %453 = vector.shape_cast %452 : vector<8x128xf32> to vector<1x8x128xf32>
    %cst_101 = arith.constant dense<0.000000e+00> : vector<1xf32>
    %454 = vector.multi_reduction <add>, %453, %cst_101 [1, 2] : vector<1x8x128xf32> to vector<1xf32>
    %455 = vector.shape_cast %454 : vector<1xf32> to vector<1x1x1xf32>
    %456 = vector.extract %455[0, 0, 0] : f32 from vector<1x1x1xf32>
    %c0_102 = arith.constant 0 : index
    %c9 = arith.constant 9 : index
    %457 = memref.load %arg5[%c0_102, %c9] : memref<1x15xf32, #tpu.memory_space<smem>>
    memref.store %456, %arg5[%c0_102, %c9] : memref<1x15xf32, #tpu.memory_space<smem>>
    %458 = arith.mulf %47, %377 : vector<8x128xf32>
    %459 = vector.shape_cast %458 : vector<8x128xf32> to vector<1x8x128xf32>
    %cst_103 = arith.constant dense<0.000000e+00> : vector<1xf32>
    %460 = vector.multi_reduction <add>, %459, %cst_103 [1, 2] : vector<1x8x128xf32> to vector<1xf32>
    %461 = vector.shape_cast %460 : vector<1xf32> to vector<1x1x1xf32>
    %462 = vector.extract %461[0, 0, 0] : f32 from vector<1x1x1xf32>
    %c0_104 = arith.constant 0 : index
    %c14 = arith.constant 14 : index
    %463 = memref.load %arg5[%c0_104, %c14] : memref<1x15xf32, #tpu.memory_space<smem>>
    memref.store %462, %arg5[%c0_104, %c14] : memref<1x15xf32, #tpu.memory_space<smem>>
    return
  }
  func.func @transform_0(%arg0: i32) -> (i32, i32, i32) {
    %c0_i32 = arith.constant 0 : i32
    %c0_i32_0 = arith.constant 0 : i32
    %c0_i32_1 = arith.constant 0 : i32
    return %c0_i32, %arg0, %c0_i32_0 : i32, i32, i32
  }
  func.func @transform_1(%arg0: i32) -> (i32, i32, i32) {
    %c0_i32 = arith.constant 0 : i32
    %c0_i32_0 = arith.constant 0 : i32
    %c0_i32_1 = arith.constant 0 : i32
    return %c0_i32, %arg0, %c0_i32_0 : i32, i32, i32
  }
  func.func @transform_2(%arg0: i32) -> (i32, i32, i32) {
    %c0_i32 = arith.constant 0 : i32
    %c0_i32_0 = arith.constant 0 : i32
    %c0_i32_1 = arith.constant 0 : i32
    return %c0_i32, %arg0, %c0_i32_0 : i32, i32, i32
  }
  func.func @transform_3(%arg0: i32) -> (i32, i32) {
    %c0_i32 = arith.constant 0 : i32
    %c0_i32_0 = arith.constant 0 : i32
    return %arg0, %c0_i32 : i32, i32
  }
  func.func @transform_4(%arg0: i32) -> (i32, i32) {
    %c0_i32 = arith.constant 0 : i32
    %c0_i32_0 = arith.constant 0 : i32
    return %arg0, %c0_i32 : i32, i32
  }
}

</mosaic_0001>

<bundles_post_ra>
// kernel: tpu_custom_call.1
= control target key start
LH: loop header
LB: loop body
LE: loop exit
PB: predicated region body
PF: predicated region fallthrough
CT: control target
= control target key end

     0   :  { %9 = vsyncpa [#allocation3], 0  ;;  %s988_s0 = inlined_call_operand.hbm [shape: f32[2,8,128], index: 0, kind: input, shape index: {}]   ;;  %s989_s1 = inlined_call_operand.hbm [shape: f32[2,8,128], index: 1, kind: input, shape index: {}]   ;;  %s990_s2 = inlined_call_operand.hbm [shape: f32[5,8,128], index: 2, kind: input, shape index: {}]   ;;  %s991_s3 = inlined_call_operand.vmem [shape: s32[8,128], index: 3, kind: input, shape index: {}]   ;;  %s992_s4 = inlined_call_operand.hbm [shape: f32[1,15], index: 4, kind: output, shape index: {}]  }
   0x1   :  { %10 = vsyncpa [#allocation6], 0 }
   0x2   :  { %11 = vsyncpa [#allocation4], 0  ;;  %s718_s15 = smov [#allocation5]   ;;  %s719_s17 = smov [#allocation2]  }
   0x3   :  { %s29_s16 = sshll.u32 %s718_s15, 4  ;;  %s17_s18 = sshll.u32 %s719_s17, 4  ;;  %s30_s16 = int_to_ptr.vmem [resolvable:$true] %s29_s16  ;;  %s751_s18 = int_to_ptr.vmem [resolvable:$true] %s17_s18 }
   0x4   :  { %s636_s21 = scalar_lea.hbm %s989_s1, 256 }
   0x5   :  { %p637_p0 = scmp.ne.s32.totalorder %s989_s1, %s636_s21  ;;  %p640_p1 = scmp.lt.u32.totalorder %s636_s21, %s989_s1 }
   0x7   :  { %p642_p2 = pnand %p640_p1, %p637_p0 }
   0x9   :  { %645 = shalt.err (!%p642_p2)
}
   0xa   :  { %s646_s26 = scalar_lea.vmem %s30_s16, 256  ;;  %p651_p4 = scmp.lt.s32.totalorder %s30_s16, %s30_s16 }
   0xb   :  { %p647_p3 = scmp.ne.s32.totalorder %s30_s16, %s646_s26  ;;  %p652_p5 = scmp.lt.s32.totalorder %s646_s26, %s646_s26 }
   0xd   :  { %p653_p6 = por %p652_p5, %p651_p4 }
   0xf   :  { %p654_p7 = pnand %p653_p6, %p647_p3 }
  0x11   :  { %657 = shalt.err (!%p654_p7)
}
  0x12   :  { %s720_s27 = smov 128   ;;  %s721_s28 = smov 8  }
  0x13   :  { %35 = dma.hbm_to_vmem [thread:$0]  %s989_s1, 256, %s30_s16, [#allocation6], %s720_s27, %s720_s27, %s721_s28  }
  0x14   :  { %s658_s7 = scalar_lea.hbm %s988_s0, 256 }
  0x15   :  { %p659_p8 = scmp.ne.s32.totalorder %s988_s0, %s658_s7  ;;  %p662_p9 = scmp.lt.u32.totalorder %s658_s7, %s988_s0 }
  0x17   :  { %p664_p10 = pnand %p662_p9, %p659_p8 }
  0x19   :  { %667 = shalt.err (!%p664_p10)
}
  0x1a   :  { %s668_s12 = scalar_lea.vmem %s751_s18, 256  ;;  %p673_p12 = scmp.lt.s32.totalorder %s751_s18, %s751_s18 }
  0x1b   :  { %p669_p11 = scmp.ne.s32.totalorder %s751_s18, %s668_s12  ;;  %p674_p13 = scmp.lt.s32.totalorder %s668_s12, %s668_s12 }
  0x1d   :  { %p675_p0 = por %p674_p13, %p673_p12 }
  0x1f   :  { %p676_p1 = pnand %p675_p0, %p669_p11 }
  0x21   :  { %679 = shalt.err (!%p676_p1)
}
  0x22   :  { %23 = dma.hbm_to_vmem [thread:$0]  %s988_s0, 256, %s751_s18, [#allocation3], %s720_s27, %s720_s27, %s721_s28  }
  0x23   :  { %s722_s14 = smov [#allocation7]   ;;  %s680_s19 = scalar_lea.hbm %s990_s2, 640 }
  0x24   :  { %s41_s15 = sshll.u32 %s722_s14, 4  ;;  %p681_p2 = scmp.ne.s32.totalorder %s990_s2, %s680_s19  ;;  %s42_s15 = int_to_ptr.vmem [resolvable:$true] %s41_s15 }
  0x25   :  { %p684_p3 = scmp.lt.u32.totalorder %s680_s19, %s990_s2 }
  0x27   :  { %p686_p4 = pnand %p684_p3, %p681_p2 }
  0x29   :  { %689 = shalt.err (!%p686_p4)
}
  0x2a   :  { %s690_s24 = scalar_lea.vmem %s42_s15, 640  ;;  %p695_p6 = scmp.lt.s32.totalorder %s42_s15, %s42_s15 }
  0x2b   :  { %p691_p5 = scmp.ne.s32.totalorder %s42_s15, %s690_s24  ;;  %p696_p7 = scmp.lt.s32.totalorder %s690_s24, %s690_s24 }
  0x2d   :  { %p697_p8 = por %p696_p7, %p695_p6 }
  0x2f   :  { %p698_p9 = pnand %p697_p8, %p691_p5 }
  0x31   :  { %701 = shalt.err (!%p698_p9)
}
  0x32   :  { %47 = dma.hbm_to_vmem [thread:$0]  %s990_s2, 640, %s42_s15, [#allocation6], %s720_s27, %s720_s27, %s721_s28  }
  0x33   :  { %712 = dma.done.wait [#allocation3], 256  }
  0x34   :  { %713 = vsyncadd [#allocation3], 4294967040 }
  0x35   :  { %714 = dma.done.wait [#allocation6], 896  }
  0x36   :  { %715 = vsyncadd [#allocation6], 4294966400  ;;  %v803_v0 = vld [vmem:[#allocation7] sm:$0xff]  ;;  %v805_v1 = vld [vmem:[#allocation7 + $0x8] sm:$0xff]  ;;  %v723_v23 = vmov 0.0   ;;  %s702_s15 = scalar_lea.hbm %s992_s4, 16 }
  0x37   :  { %v807_v2 = vld [vmem:[#allocation7 + $0x10] sm:$0xff]  ;;  %v112_v3 = vmax.f32 %v803_v0, %v805_v1  ;;  %v811_v4 = vld [vmem:[#allocation7 + $0x18] sm:$0xff]  ;;  %v814_v6 = vld [vmem:[#allocation7 + $0x20] sm:$0xff]  ;;  %p703_p10 = scmp.ne.s32.totalorder %s992_s4, %s702_s15  ;;  %p706_p11 = scmp.lt.u32.totalorder %s702_s15, %s992_s4 }
  0x38   :  { %v833_v19 = vld [vmem:[%s991_s3] sm:$0xff] }
  0x39   :  { %v113_v5 = vmax.f32 %v112_v3, %v807_v2  ;;  %vm106_vm0 = vcmp.eq.s32.totalorder %v833_v19, 3  ;;  %vm109_vm1 = vcmp.eq.s32.totalorder %v833_v19, 4  ;;  %vm103_vm2 = vcmp.eq.s32.totalorder %v833_v19, 2  ;;  %p708_p12 = pnand %p706_p11, %p703_p10 }
  0x3a   :  { %v838_v24 = vsel %vm106_vm0, 1.0, %v723_v23  ;;  %v841_v25 = vsel %vm109_vm1, 1.0, %v723_v23  ;;  %v849_v32 = vsel %vm103_vm2, 1.0, %v723_v23  ;;  %vm100_vm3 = vcmp.eq.s32.totalorder %v833_v19, 1 }
  0x3b   :  { %v114_v7 = vmax.f32 %v113_v5, %v811_v4  ;;  %v120_v30 = vmul.f32 %v841_v25, %v814_v6  ;;  %v128_v31 = vmul.f32 %v838_v24, %v811_v4  ;;  %v136_v36 = vmul.f32 %v849_v32, %v807_v2 }
  0x3c   :  { %v855_v37 = vsel %vm100_vm3, 1.0, %v723_v23  ;;  %vm97_vm4 = vcmp.eq.s32.totalorder %v833_v19, 0  ;;  %vm69_vm5 = vcmp.gt.s32.totalorder %v833_v19, 0 }
  0x3d   :  { %v818_v8 = vmax.f32 %v114_v7, %v814_v6  ;;  %v129_v35 = vadd.f32 %v128_v31, %v120_v30  ;;  %v144_v39 = vmul.f32 %v855_v37, %v805_v1  ;;  %v861_v40 = vsel %vm97_vm4, 1.0, %v723_v23 }
  0x3e   :  { %v152_v42 = vmul.f32 %v861_v40, %v803_v0  ;;  %v878_v50 = vsel %vm69_vm5, 1.0, %v723_v23 }
  0x3f   :  { %v116_v9 = vsub.f32 %v814_v6, %v818_v8  ;;  %v124_v10 = vsub.f32 %v811_v4, %v818_v8  ;;  %v132_v11 = vsub.f32 %v807_v2, %v818_v8  ;;  %v140_v12 = vsub.f32 %v805_v1, %v818_v8 }
  0x40   :  { %v148_v13 = vsub.f32 %v803_v0, %v818_v8  ;;  %v137_v38 = vadd.f32 %v136_v36, %v129_v35 }
  0x41   :  { %v117_v14 = vmul.f32 1.442695, %v116_v9  ;;  %v125_v15 = vmul.f32 1.442695, %v124_v10  ;;  %v133_v16 = vmul.f32 1.442695, %v132_v11 }
  0x42   :  { %v141_v17 = vmul.f32 1.442695, %v140_v12  ;;  %v149_v18 = vmul.f32 1.442695, %v148_v13  ;;  %v145_v41 = vadd.f32 %v144_v39, %v137_v38 }
  0x43   :  { %624 = vpow2.f32 %v117_v14 }
  0x44   :  { %626 = vpow2.f32 %v125_v15  ;;  %v153_v44 = vadd.f32 %v152_v42, %v145_v41 }
  0x45   :  { %628 = vpow2.f32 %v133_v16 }
  0x46   :  { %630 = vpow2.f32 %v141_v17 }
  0x47   :  { %632 = vpow2.f32 %v149_v18 }
  0x4d   :  { %v625_v20 = vpop.eup %624 }
  0x4e   :  { %v627_v21 = vpop.eup %626 }
  0x4f   :  { %v629_v22 = vpop.eup %628  ;;  %v127_v26 = vadd.f32 %v627_v21, %v625_v20 }
  0x50   :  { %v631_v27 = vpop.eup %630 }
  0x51   :  { %v135_v28 = vadd.f32 %v629_v22, %v127_v26  ;;  %v633_v29 = vpop.eup %632 }
  0x53   :  { %v143_v33 = vadd.f32 %v631_v27, %v135_v28 }
  0x55   :  { %v151_v34 = vadd.f32 %v633_v29, %v143_v33 }
  0x57   :  { %634 = vlog2.f32 %v151_v34 }
  0x61   :  { %v635_v43 = vpop.eup %634 }
  0x62   :  { %v157_v45 = vmul.f32 0.6931472, %v635_v43 }
  0x64   :  { %v158_v46 = vadd.f32 %v157_v45, %v818_v8 }
  0x66   :  { %v867_v47 = vsub.f32 %v158_v46, %v153_v44 }
  0x68   :  { %v160_v48 = vsel %vm69_vm5, 0.0, %v867_v47 }
  0x69   :  { %v872_v49 = vmax.f32 %v160_v48, 0.0 }
  0x6b   :  { %166 = vmax.xlane.f32.xlu0 %v872_v49 }
  0x6f   :  { %162 = vadd.xlane.f32.xlu0 %v878_v50 }
  0xf8   :  { %v167_v51 = vpop.xlane.xlu0 %166 }
  0xf9   :  { %v168_v52 = vadd.f32 1.0, %v167_v51 }
  0xfb   :  { %v170_v53 = vmul.f32 0.5, %v168_v52 }
  0xfc   :  { %v883_v55 = vpop.xlane.xlu0 %162 }
  0xfd   :  { %vm171_vm6 = vcmp.ge.f32.partialorder %v872_v49, %v170_v53  ;;  %v164_v56 = vmul.f32 3.0, %v883_v55 }
  0xfe   :  { %v564_v54 = vsel %vm171_vm6, 1.0, %v723_v23 }
  0xff   :  { %174 = vadd.xlane.f32.xlu1 %v564_v54  ;;  %v886_v57 = vmin.f32 %v164_v56, 127.0 }
 0x18c   :  { %v175_v58 = vpop.xlane.xlu1 %174 }
 0x18d   :  { %vm176_vm7 = vcmp.ge.f32.partialorder %v175_v58, %v886_v57 }
 0x18e   :  { %v177_v59 = vsel %vm176_vm7, %v170_v53, 0.0  ;;  %v178_v60 = vsel %vm176_vm7, %v168_v52, %v170_v53 }
 0x18f   :  { %v179_v61 = vadd.f32 %v178_v60, %v177_v59 }
 0x191   :  { %v180_v62 = vmul.f32 0.5, %v179_v61 }
 0x193   :  { %vm181_vm8 = vcmp.ge.f32.partialorder %v872_v49, %v180_v62 }
 0x194   :  { %v565_v63 = vsel %vm181_vm8, 1.0, %v723_v23 }
 0x195   :  { %184 = vadd.xlane.f32.xlu1 %v565_v63 }
 0x222   :  { %v185_v3 = vpop.xlane.xlu1 %184 }
 0x223   :  { %vm186_vm9 = vcmp.ge.f32.partialorder %v185_v3, %v886_v57 }
 0x224   :  { %v187_v5 = vsel %vm186_vm9, %v180_v62, %v177_v59  ;;  %v188_v7 = vsel %vm186_vm9, %v178_v60, %v180_v62 }
 0x225   :  { %v189_v9 = vadd.f32 %v188_v7, %v187_v5 }
 0x227   :  { %v190_v10 = vmul.f32 0.5, %v189_v9 }
 0x229   :  { %vm191_vm10 = vcmp.ge.f32.partialorder %v872_v49, %v190_v10 }
 0x22a   :  { %v566_v11 = vsel %vm191_vm10, 1.0, %v723_v23 }
 0x22b   :  { %194 = vadd.xlane.f32.xlu0 %v566_v11 }
 0x2b8   :  { %v195_v12 = vpop.xlane.xlu0 %194 }
 0x2b9   :  { %vm196_vm11 = vcmp.ge.f32.partialorder %v195_v12, %v886_v57 }
 0x2ba   :  { %v197_v13 = vsel %vm196_vm11, %v190_v10, %v187_v5  ;;  %v198_v14 = vsel %vm196_vm11, %v188_v7, %v190_v10 }
 0x2bb   :  { %v199_v15 = vadd.f32 %v198_v14, %v197_v13 }
 0x2bd   :  { %v200_v16 = vmul.f32 0.5, %v199_v15 }
 0x2bf   :  { %vm201_vm12 = vcmp.ge.f32.partialorder %v872_v49, %v200_v16 }
 0x2c0   :  { %v567_v17 = vsel %vm201_vm12, 1.0, %v723_v23 }
 0x2c1   :  { %204 = vadd.xlane.f32.xlu1 %v567_v17 }
 0x34e   :  { %v205_v18 = vpop.xlane.xlu1 %204 }
 0x34f   :  { %vm206_vm13 = vcmp.ge.f32.partialorder %v205_v18, %v886_v57 }
 0x350   :  { %v207_v20 = vsel %vm206_vm13, %v200_v16, %v197_v13  ;;  %v208_v21 = vsel %vm206_vm13, %v198_v14, %v200_v16 }
 0x351   :  { %v209_v22 = vadd.f32 %v208_v21, %v207_v20 }
 0x353   :  { %v210_v26 = vmul.f32 0.5, %v209_v22 }
 0x355   :  { %vm211_vm14 = vcmp.ge.f32.partialorder %v872_v49, %v210_v26 }
 0x356   :  { %v568_v27 = vsel %vm211_vm14, 1.0, %v723_v23 }
 0x357   :  { %214 = vadd.xlane.f32.xlu0 %v568_v27 }
 0x3e4   :  { %v215_v28 = vpop.xlane.xlu0 %214 }
 0x3e5   :  { %vm216_vm15 = vcmp.ge.f32.partialorder %v215_v28, %v886_v57 }
 0x3e6   :  { %v217_v29 = vsel %vm216_vm15, %v210_v26, %v207_v20  ;;  %v218_v30 = vsel %vm216_vm15, %v208_v21, %v210_v26 }
 0x3e7   :  { %v219_v31 = vadd.f32 %v218_v30, %v217_v29 }
 0x3e9   :  { %v220_v33 = vmul.f32 0.5, %v219_v31 }
 0x3eb   :  { %vm221_vm0 = vcmp.ge.f32.partialorder %v872_v49, %v220_v33 }
 0x3ec   :  { %v569_v34 = vsel %vm221_vm0, 1.0, %v723_v23 }
 0x3ed   :  { %224 = vadd.xlane.f32.xlu1 %v569_v34 }
 0x47a   :  { %v225_v35 = vpop.xlane.xlu1 %224 }
 0x47b   :  { %vm226_vm1 = vcmp.ge.f32.partialorder %v225_v35, %v886_v57 }
 0x47c   :  { %v227_v36 = vsel %vm226_vm1, %v220_v33, %v217_v29  ;;  %v228_v38 = vsel %vm226_vm1, %v218_v30, %v220_v33 }
 0x47d   :  { %v229_v39 = vadd.f32 %v228_v38, %v227_v36 }
 0x47f   :  { %v230_v41 = vmul.f32 0.5, %v229_v39 }
 0x481   :  { %vm231_vm2 = vcmp.ge.f32.partialorder %v872_v49, %v230_v41 }
 0x482   :  { %v570_v42 = vsel %vm231_vm2, 1.0, %v723_v23 }
 0x483   :  { %234 = vadd.xlane.f32.xlu0 %v570_v42 }
 0x510   :  { %v235_v43 = vpop.xlane.xlu0 %234 }
 0x511   :  { %vm236_vm3 = vcmp.ge.f32.partialorder %v235_v43, %v886_v57 }
 0x512   :  { %v237_v44 = vsel %vm236_vm3, %v230_v41, %v227_v36  ;;  %v238_v45 = vsel %vm236_vm3, %v228_v38, %v230_v41 }
 0x513   :  { %v239_v46 = vadd.f32 %v238_v45, %v237_v44 }
 0x515   :  { %v240_v48 = vmul.f32 0.5, %v239_v46 }
 0x517   :  { %vm241_vm4 = vcmp.ge.f32.partialorder %v872_v49, %v240_v48 }
 0x518   :  { %v571_v51 = vsel %vm241_vm4, 1.0, %v723_v23 }
 0x519   :  { %244 = vadd.xlane.f32.xlu1 %v571_v51 }
 0x5a6   :  { %v245_v52 = vpop.xlane.xlu1 %244 }
 0x5a7   :  { %vm246_vm6 = vcmp.ge.f32.partialorder %v245_v52, %v886_v57 }
 0x5a8   :  { %v247_v53 = vsel %vm246_vm6, %v240_v48, %v237_v44  ;;  %v248_v54 = vsel %vm246_vm6, %v238_v45, %v240_v48 }
 0x5a9   :  { %v249_v56 = vadd.f32 %v248_v54, %v247_v53 }
 0x5ab   :  { %v250_v58 = vmul.f32 0.5, %v249_v56 }
 0x5ad   :  { %vm251_vm7 = vcmp.ge.f32.partialorder %v872_v49, %v250_v58 }
 0x5ae   :  { %v572_v59 = vsel %vm251_vm7, 1.0, %v723_v23 }
 0x5af   :  { %254 = vadd.xlane.f32.xlu0 %v572_v59 }
 0x63c   :  { %v255_v60 = vpop.xlane.xlu0 %254 }
 0x63d   :  { %vm256_vm8 = vcmp.ge.f32.partialorder %v255_v60, %v886_v57 }
 0x63e   :  { %v257_v61 = vsel %vm256_vm8, %v250_v58, %v247_v53  ;;  %v258_v62 = vsel %vm256_vm8, %v248_v54, %v250_v58 }
 0x63f   :  { %v259_v63 = vadd.f32 %v258_v62, %v257_v61 }
 0x641   :  { %v260_v3 = vmul.f32 0.5, %v259_v63 }
 0x643   :  { %vm261_vm9 = vcmp.ge.f32.partialorder %v872_v49, %v260_v3 }
 0x644   :  { %v573_v5 = vsel %vm261_vm9, 1.0, %v723_v23 }
 0x645   :  { %264 = vadd.xlane.f32.xlu1 %v573_v5 }
 0x6d2   :  { %v265_v7 = vpop.xlane.xlu1 %264 }
 0x6d3   :  { %vm266_vm10 = vcmp.ge.f32.partialorder %v265_v7, %v886_v57 }
 0x6d4   :  { %v267_v9 = vsel %vm266_vm10, %v260_v3, %v257_v61  ;;  %v268_v10 = vsel %vm266_vm10, %v258_v62, %v260_v3 }
 0x6d5   :  { %v269_v11 = vadd.f32 %v268_v10, %v267_v9 }
 0x6d7   :  { %v270_v12 = vmul.f32 0.5, %v269_v11  ;;  %v60_v11 = vld [vmem:[#allocation2 + $0x8] sm:$0xff] }
 0x6d9   :  { %vm271_vm11 = vcmp.ge.f32.partialorder %v872_v49, %v270_v12 }
 0x6da   :  { %v574_v13 = vsel %vm271_vm11, 1.0, %v723_v23 }
 0x6db   :  { %274 = vadd.xlane.f32.xlu0 %v574_v13  ;;  %v62_v13 = vld [vmem:[#allocation5 + $0x8] sm:$0xff] }
 0x768   :  { %v275_v14 = vpop.xlane.xlu0 %274 }
 0x769   :  { %vm276_vm12 = vcmp.ge.f32.partialorder %v275_v14, %v886_v57 }
 0x76a   :  { %v277_v15 = vsel %vm276_vm12, %v270_v12, %v267_v9  ;;  %v278_v16 = vsel %vm276_vm12, %v268_v10, %v270_v12  ;;  %v59_v10 = vld [vmem:[#allocation2] sm:$0xff]  ;;  %v61_v12 = vld [vmem:[#allocation5] sm:$0xff] }
 0x76b   :  { %v279_v17 = vadd.f32 %v278_v16, %v277_v15  ;;  %v72_v14 = vsub.f32 %v59_v10, %v61_v12 }
 0x76d   :  { %v280_v18 = vmul.f32 0.5, %v279_v17 }
 0x76f   :  { %vm281_vm13 = vcmp.ge.f32.partialorder %v872_v49, %v280_v18 }
 0x770   :  { %v575_v20 = vsel %vm281_vm13, 1.0, %v723_v23 }
 0x771   :  { %284 = vadd.xlane.f32.xlu1 %v575_v20 }
 0x7fe   :  { %v285_v21 = vpop.xlane.xlu1 %284 }
 0x7ff   :  { %vm286_vm14 = vcmp.ge.f32.partialorder %v285_v21, %v886_v57 }
 0x800   :  { %v287_v22 = vsel %vm286_vm14, %v280_v18, %v277_v15  ;;  %v288_v26 = vsel %vm286_vm14, %v278_v16, %v280_v18  ;;  %v73_v15 = vsub.f32 %v60_v11, %v62_v13  ;;  %v74_v16 = vand.u32 2147483647, %v72_v14 }
 0x801   :  { %v289_v27 = vadd.f32 %v288_v26, %v287_v22  ;;  %v78_v18 = vmul.f32 0.5, %v72_v14 }
 0x802   :  { %v75_v17 = vand.u32 2147483647, %v73_v15  ;;  %v79_v20 = vmul.f32 0.5, %v73_v15  ;;  %vm76_vm11 = vcmp.lt.f32.partialorder %v74_v16, 1.0 }
 0x803   :  { %v290_v28 = vmul.f32 0.5, %v289_v27  ;;  %v80_v21 = vmul.f32 %v78_v18, %v72_v14 }
 0x804   :  { %v558_v27 = vadd.f32 -0.5, %v75_v17  ;;  %vm77_vm12 = vcmp.lt.f32.partialorder %v75_v17, 1.0 }
 0x805   :  { %vm291_vm15 = vcmp.ge.f32.partialorder %v872_v49, %v290_v28 }
 0x806   :  { %v576_v29 = vsel %vm291_vm15, 1.0, %v723_v23 }
 0x807   :  { %294 = vadd.xlane.f32.xlu0 %v576_v29 }
 0x894   :  { %v295_v30 = vpop.xlane.xlu0 %294 }
 0x895   :  { %vm296_vm0 = vcmp.ge.f32.partialorder %v295_v30, %v886_v57 }
 0x896   :  { %v297_v31 = vsel %vm296_vm0, %v290_v28, %v287_v22  ;;  %v298_v33 = vsel %vm296_vm0, %v288_v26, %v290_v28  ;;  %v81_v22 = vmul.f32 %v79_v20, %v73_v15  ;;  %v557_v26 = vadd.f32 -0.5, %v74_v16 }
 0x897   :  { %v299_v34 = vadd.f32 %v298_v33, %v297_v31 }
 0x899   :  { %v300_v35 = vmul.f32 0.5, %v299_v34 }
 0x89b   :  { %vm301_vm1 = vcmp.ge.f32.partialorder %v872_v49, %v300_v35 }
 0x89c   :  { %v577_v36 = vsel %vm301_vm1, 1.0, %v723_v23  ;;  %vm122_vm1 = vcmp.eq.f32.partialorder %v814_v6, %v818_v8 }
 0x89d   :  { %304 = vadd.xlane.f32.xlu1 %v577_v36 }
 0x92a   :  { %v305_v38 = vpop.xlane.xlu1 %304 }
 0x92b   :  { %vm306_vm2 = vcmp.ge.f32.partialorder %v305_v38, %v886_v57 }
 0x92c   :  { %v307_v39 = vsel %vm306_vm2, %v300_v35, %v297_v31  ;;  %v308_v41 = vsel %vm306_vm2, %v298_v33, %v300_v35  ;;  %v84_v31 = vsel %vm76_vm11, %v80_v21, %v557_v26  ;;  %v85_v33 = vsel %vm77_vm12, %v81_v22, %v558_v27 }
 0x92d   :  { %v309_v42 = vadd.f32 %v308_v41, %v307_v39  ;;  %v86_v36 = vadd.f32 %v85_v33, %v84_v31  ;;  %vm130_vm2 = vcmp.eq.f32.partialorder %v811_v4, %v818_v8 }
 0x92f   :  { %v310_v43 = vmul.f32 0.5, %v309_v42 }
 0x931   :  { %vm311_vm3 = vcmp.ge.f32.partialorder %v872_v49, %v310_v43 }
 0x932   :  { %v578_v44 = vsel %vm311_vm3, 1.0, %v723_v23  ;;  %vm138_vm3 = vcmp.eq.f32.partialorder %v807_v2, %v818_v8 }
 0x933   :  { %314 = vadd.xlane.f32.xlu0 %v578_v44 }
 0x9c0   :  { %v315_v45 = vpop.xlane.xlu0 %314 }
 0x9c1   :  { %vm316_vm4 = vcmp.ge.f32.partialorder %v315_v45, %v886_v57 }
 0x9c2   :  { %v317_v46 = vsel %vm316_vm4, %v310_v43, %v307_v39  ;;  %v318_v48 = vsel %vm316_vm4, %v308_v41, %v310_v43  ;;  %v87_v39 = vmul.f32 %v878_v50, %v86_v36  ;;  %v378_v41 = vrot.slane %v883_v55, 4 }
 0x9c3   :  { %v319_v51 = vadd.f32 %v318_v48, %v317_v46  ;;  %vm146_vm4 = vcmp.eq.f32.partialorder %v805_v1, %v818_v8 }
 0x9c4   :  { %v379_v42 = vadd.f32 %v378_v41, %v883_v55 }
 0x9c5   :  { %v320_v52 = vmul.f32 0.5, %v319_v51 }
 0x9c6   :  { %v380_v51 = vrot.slane %v379_v42, 2 }
 0x9c7   :  { %vm321_vm6 = vcmp.ge.f32.partialorder %v872_v49, %v320_v52 }
 0x9c8   :  { %v579_v53 = vsel %vm321_vm6, 1.0, %v723_v23  ;;  %vm154_vm6 = vcmp.eq.f32.partialorder %v803_v0, %v818_v8 }
 0x9c9   :  { %324 = vadd.xlane.f32.xlu1 %v579_v53 }
 0xa56   :  { %v325_v54 = vpop.xlane.xlu1 %324 }
 0xa57   :  { %vm326_vm7 = vcmp.ge.f32.partialorder %v325_v54, %v886_v57 }
 0xa58   :  { %v327_v56 = vsel %vm326_vm7, %v320_v52, %v317_v46  ;;  %v328_v58 = vsel %vm326_vm7, %v318_v48, %v320_v52 }
 0xa59   :  { %v329_v59 = vadd.f32 %v328_v58, %v327_v56 }
 0xa5b   :  { %v330_v60 = vmul.f32 0.5, %v329_v59 }
 0xa5d   :  { %vm331_vm8 = vcmp.ge.f32.partialorder %v872_v49, %v330_v60 }
 0xa5e   :  { %v580_v61 = vsel %vm331_vm8, 1.0, %v723_v23 }
 0xa5f   :  { %334 = vadd.xlane.f32.xlu0 %v580_v61 }
 0xaec   :  { %v335_v62 = vpop.xlane.xlu0 %334 }
 0xaed   :  { %vm336_vm9 = vcmp.ge.f32.partialorder %v335_v62, %v886_v57 }
 0xaee   :  { %v337_v63 = vsel %vm336_vm9, %v330_v60, %v327_v56  ;;  %v338_v3 = vsel %vm336_vm9, %v328_v58, %v330_v60  ;;  %v381_v56 = vadd.f32 %v380_v51, %v379_v42 }
 0xaef   :  { %v339_v5 = vadd.f32 %v338_v3, %v337_v63 }
 0xaf0   :  { %v382_v55 = vrot.slane %v381_v56, 1 }
 0xaf1   :  { %v340_v7 = vmul.f32 0.5, %v339_v5 }
 0xaf2   :  { %v383_v62 = vadd.f32 %v382_v55, %v381_v56 }
 0xaf3   :  { %vm341_vm10 = vcmp.ge.f32.partialorder %v872_v49, %v340_v7 }
 0xaf4   :  { %v581_v9 = vsel %vm341_vm10, 1.0, %v723_v23 }
 0xaf5   :  { %344 = vadd.xlane.f32.xlu1 %v581_v9 }
 0xb82   :  { %v345_v28 = vpop.xlane.xlu1 %344 }
 0xb83   :  { %vm346_vm13 = vcmp.ge.f32.partialorder %v345_v28, %v886_v57 }
 0xb84   :  { %v347_v29 = vsel %vm346_vm13, %v340_v7, %v337_v63  ;;  %v348_v30 = vsel %vm346_vm13, %v338_v3, %v340_v7  ;;  %v724_v63 = vmov 0  }
 0xb85   :  { %v349_v34 = vadd.f32 %v348_v30, %v347_v29  ;;  %v123_v3 = vsel %vm122_vm1, 4, %v724_v63 }
 0xb86   :  { %v131_v5 = vsel %vm130_vm2, 3, %v123_v3 }
 0xb87   :  { %v350_v35 = vmul.f32 0.5, %v349_v34  ;;  %v139_v7 = vsel %vm138_vm3, 2, %v131_v5 }
 0xb88   :  { %v147_v9 = vsel %vm146_vm4, 1, %v139_v7 }
 0xb89   :  { %vm351_vm14 = vcmp.ge.f32.partialorder %v872_v49, %v350_v35  ;;  %v155_v10 = vsel %vm154_vm6, 0, %v147_v9 }
 0xb8a   :  { %v582_v38 = vsel %vm351_vm14, 1.0, %v723_v23  ;;  %vm372_vm7 = vcmp.eq.s32.totalorder %v155_v10, %v833_v19 }
 0xb8b   :  { %354 = vadd.xlane.f32.xlu0 %v582_v38  ;;  %v585_v4 = vsel %vm372_vm7, 1.0, %v723_v23 }
 0xb8f   :  { %88 = vadd.xlane.f32.xlu0 %v87_v39 }
 0xc18   :  { %v355_v43 = vpop.xlane.xlu0 %354 }
 0xc19   :  { %vm356_vm15 = vcmp.ge.f32.partialorder %v355_v43, %v886_v57 }
 0xc1a   :  { %v357_v44 = vsel %vm356_vm15, %v350_v35, %v347_v29  ;;  %v358_v45 = vsel %vm356_vm15, %v348_v30, %v350_v35 }
 0xc1b   :  { %v359_v46 = vadd.f32 %v358_v45, %v357_v44 }
 0xc1c   :  { %v89_v48 = vpop.xlane.xlu0 %88 }
 0xc1d   :  { %v90_v52 = vrot.slane %v89_v48, 4  ;;  %v360_v53 = vmul.f32 0.5, %v359_v46 }
 0xc1f   :  { %v91_v54 = vadd.f32 %v90_v52, %v89_v48  ;;  %vm361_vm0 = vcmp.ge.f32.partialorder %v872_v49, %v360_v53 }
 0xc20   :  { %v583_v50 = vsel %vm361_vm0, 1.0, %v723_v23 }
 0xc21   :  { %v92_v58 = vrot.slane %v91_v54, 2  ;;  %364 = vadd.xlane.f32.xlu1 %v583_v50 }
 0xc23   :  { %v93_v59 = vadd.f32 %v92_v58, %v91_v54 }
 0xc25   :  { %v94_v60 = vrot.slane %v93_v59, 1 }
 0xc27   :  { %v95_v61 = vadd.f32 %v94_v60, %v93_v59 }
 0xc29   :  { %586 = vpush %v95_v61 }
 0xc2a   :  { %588 = vpush %v383_v62 }
 0xc5a   :  { %s587_s3 = spop %586 }
 0xc5b   :  { %377 = sst [smem:[#allocation8]] %s587_s3  ;;  %s589_s26 = spop %588 }
 0xc5c   :  { %386 = sst [smem:[#allocation8 + $0x1]] %s589_s26 }
 0xcae   :  { %v365_v11 = vpop.xlane.xlu1 %364 }
 0xcaf   :  { %vm366_vm8 = vcmp.ge.f32.partialorder %v365_v11, %v886_v57 }
 0xcb0   :  { %v367_v6 = vsel %vm366_vm8, %v360_v53, %v357_v44 }
 0xcb1   :  { %vm368_vm9 = vcmp.ge.f32.partialorder %v872_v49, %v367_v6 }
 0xcb2   :  { %vm369_vm10 = vmor %vm69_vm5, %vm368_vm9 }
 0xcb3   :  { %v584_v1 = vsel %vm369_vm10, 1.0, %v723_v23 }
 0xcb4   :  { %399 = vadd.xlane.f32.xlu0 %v584_v1  ;;  %v387_v2 = vmul.f32 %v584_v1, %v867_v47  ;;  %v375_v0 = vmul.f32 %v585_v4, %v584_v1  ;;  %v433_v49 = vmul.f32 %v584_v1, %v861_v40  ;;  %v457_v23 = vmul.f32 %v584_v1, %v855_v37 }
 0xcb5   :  { %v481_v12 = vmul.f32 %v584_v1, %v849_v32  ;;  %v505_v14 = vmul.f32 %v584_v1, %v838_v24 }
 0xcb6   :  { %388 = vadd.xlane.f32.xlu1 %v387_v2  ;;  %v421_v8 = vmul.f32 %v861_v40, %v375_v0  ;;  %v445_v57 = vmul.f32 %v855_v37, %v375_v0  ;;  %v469_v19 = vmul.f32 %v849_v32, %v375_v0  ;;  %v493_v47 = vmul.f32 %v838_v24, %v375_v0 }
 0xcb7   :  { %v517_v13 = vmul.f32 %v841_v25, %v375_v0  ;;  %v529_v40 = vmul.f32 %v584_v1, %v841_v25 }
 0xcb8   :  { %422 = vadd.xlane.f32.xlu0 %v421_v8 }
 0xcba   :  { %410 = vadd.xlane.f32.xlu1 %v375_v0 }
 0xcbc   :  { %446 = vadd.xlane.f32.xlu0 %v445_v57 }
 0xcbe   :  { %434 = vadd.xlane.f32.xlu1 %v433_v49 }
 0xcc0   :  { %470 = vadd.xlane.f32.xlu0 %v469_v19 }
 0xcc2   :  { %458 = vadd.xlane.f32.xlu1 %v457_v23 }
 0xcc4   :  { %494 = vadd.xlane.f32.xlu0 %v493_v47 }
 0xcc6   :  { %482 = vadd.xlane.f32.xlu1 %v481_v12 }
 0xcc8   :  { %518 = vadd.xlane.f32.xlu0 %v517_v13 }
 0xcca   :  { %506 = vadd.xlane.f32.xlu1 %v505_v14 }
 0xcce   :  { %530 = vadd.xlane.f32.xlu1 %v529_v40 }
 0xd41   :  { %v400_v15 = vpop.xlane.xlu0 %399 }
 0xd42   :  { %v401_v16 = vrot.slane %v400_v15, 4 }
 0xd43   :  { %v389_v17 = vpop.xlane.xlu1 %388 }
 0xd44   :  { %v402_v37 = vadd.f32 %v401_v16, %v400_v15  ;;  %v390_v18 = vrot.slane %v389_v17, 4 }
 0xd45   :  { %v423_v20 = vpop.xlane.xlu0 %422 }
 0xd46   :  { %v403_v21 = vrot.slane %v402_v37, 2  ;;  %v391_v22 = vadd.f32 %v390_v18, %v389_v17  ;;  %v424_v26 = vrot.slane %v423_v20, 4 }
 0xd47   :  { %v411_v32 = vpop.xlane.xlu1 %410 }
 0xd48   :  { %v392_v27 = vrot.slane %v391_v22, 2  ;;  %v425_v28 = vadd.f32 %v424_v26, %v423_v20  ;;  %v412_v29 = vrot.slane %v411_v32, 4  ;;  %v404_v30 = vadd.f32 %v403_v21, %v402_v37 }
 0xd49   :  { %v447_v31 = vpop.xlane.xlu0 %446 }
 0xd4a   :  { %v426_v24 = vrot.slane %v425_v28, 2  ;;  %v413_v33 = vadd.f32 %v412_v29, %v411_v32  ;;  %v448_v34 = vrot.slane %v447_v31, 4  ;;  %v393_v25 = vadd.f32 %v392_v27, %v391_v22 }
 0xd4b   :  { %v435_v35 = vpop.xlane.xlu1 %434  ;;  %v405_v36 = vrot.slane %v404_v30, 1 }
 0xd4c   :  { %v414_v38 = vrot.slane %v413_v33, 2  ;;  %v449_v39 = vadd.f32 %v448_v34, %v447_v31  ;;  %v436_v41 = vrot.slane %v435_v35, 4  ;;  %v394_v42 = vrot.slane %v393_v25, 1 }
 0xd4d   :  { %v471_v43 = vpop.xlane.xlu0 %470  ;;  %v427_v44 = vadd.f32 %v426_v24, %v425_v28  ;;  %v406_v53 = vadd.f32 %v405_v36, %v404_v30 }
 0xd4e   :  { %v450_v45 = vrot.slane %v449_v39, 2  ;;  %v437_v46 = vadd.f32 %v436_v41, %v435_v35  ;;  %v472_v48 = vrot.slane %v471_v43, 4  ;;  %v395_v51 = vadd.f32 %v394_v42, %v393_v25 }
 0xd4f   :  { %v459_v52 = vpop.xlane.xlu1 %458  ;;  %v415_v54 = vadd.f32 %v414_v38, %v413_v33  ;;  %v428_v50 = vrot.slane %v427_v44, 1 }
 0xd50   :  { %v438_v56 = vrot.slane %v437_v46, 2  ;;  %v473_v58 = vadd.f32 %v472_v48, %v471_v43  ;;  %v460_v59 = vrot.slane %v459_v52, 4  ;;  %590 = vpush %v395_v51  ;;  %v451_v55 = vadd.f32 %v450_v45, %v449_v39 }
 0xd51   :  { %592 = vpush %v406_v53  ;;  %v495_v60 = vpop.xlane.xlu0 %494  ;;  %v416_v61 = vrot.slane %v415_v54, 1  ;;  %v429_v10 = vadd.f32 %v428_v50, %v427_v44 }
 0xd52   :  { %v474_v62 = vrot.slane %v473_v58, 2  ;;  %v461_v63 = vadd.f32 %v460_v59, %v459_v52  ;;  %v496_v3 = vrot.slane %v495_v60, 4  ;;  %v439_v5 = vadd.f32 %v438_v56, %v437_v46 }
 0xd53   :  { %v483_v7 = vpop.xlane.xlu1 %482  ;;  %v417_v9 = vadd.f32 %v416_v61, %v415_v54  ;;  %v452_v11 = vrot.slane %v451_v55, 1 }
 0xd54   :  { %v462_v6 = vrot.slane %v461_v63, 2  ;;  %v497_v4 = vadd.f32 %v496_v3, %v495_v60  ;;  %v484_v1 = vrot.slane %v483_v7, 4  ;;  %v440_v2 = vrot.slane %v439_v5, 1 }
 0xd55   :  { %594 = vpush %v417_v9  ;;  %v519_v0 = vpop.xlane.xlu0 %518  ;;  %v475_v8 = vadd.f32 %v474_v62, %v473_v58  ;;  %v453_v12 = vadd.f32 %v452_v11, %v451_v55 }
 0xd56   :  { %v498_v57 = vrot.slane %v497_v4, 2  ;;  %v485_v49 = vadd.f32 %v484_v1, %v483_v7  ;;  %596 = vpush %v429_v10  ;;  %v520_v19 = vrot.slane %v519_v0, 4  ;;  %v441_v23 = vadd.f32 %v440_v2, %v439_v5 }
 0xd57   :  { %v507_v47 = vpop.xlane.xlu1 %506  ;;  %v463_v13 = vadd.f32 %v462_v6, %v461_v63  ;;  %v476_v14 = vrot.slane %v475_v8, 1 }
 0xd58   :  { %v486_v40 = vrot.slane %v485_v49, 2  ;;  %v521_v15 = vadd.f32 %v520_v19, %v519_v0  ;;  %v508_v16 = vrot.slane %v507_v47, 4  ;;  %598 = vpush %v441_v23  ;;  %v499_v17 = vadd.f32 %v498_v57, %v497_v4 }
 0xd59   :  { %600 = vpush %v453_v12  ;;  %v464_v37 = vrot.slane %v463_v13, 1  ;;  %v477_v32 = vadd.f32 %v476_v14, %v475_v8 }
 0xd5a   :  { %v522_v18 = vrot.slane %v521_v15, 2  ;;  %v509_v20 = vadd.f32 %v508_v16, %v507_v47  ;;  %v487_v21 = vadd.f32 %v486_v40, %v485_v49  ;;  %v500_v27 = vrot.slane %v499_v17, 1 }
 0xd5b   :  { %v531_v22 = vpop.xlane.xlu1 %530  ;;  %v465_v26 = vadd.f32 %v464_v37, %v463_v13 }
 0xd5c   :  { %v523_v28 = vadd.f32 %v522_v18, %v521_v15  ;;  %v510_v29 = vrot.slane %v509_v20, 2  ;;  %v532_v30 = vrot.slane %v531_v22, 4  ;;  %v488_v31 = vrot.slane %v487_v21, 1 }
 0xd5d   :  { %602 = vpush %v465_v26  ;;  %v501_v25 = vadd.f32 %v500_v27, %v499_v17 }
 0xd5e   :  { %v533_v24 = vadd.f32 %v532_v30, %v531_v22  ;;  %604 = vpush %v477_v32  ;;  %v489_v33 = vadd.f32 %v488_v31, %v487_v21  ;;  %v511_v34 = vadd.f32 %v510_v29, %v509_v20  ;;  %v524_v35 = vrot.slane %v523_v28, 1 }
 0xd60   :  { %v534_v36 = vrot.slane %v533_v24, 2  ;;  %606 = vpush %v489_v33  ;;  %v512_v38 = vrot.slane %v511_v34, 1  ;;  %v525_v42 = vadd.f32 %v524_v35, %v523_v28 }
 0xd61   :  { %608 = vpush %v501_v25 }
 0xd62   :  { %v535_v39 = vadd.f32 %v534_v36, %v533_v24  ;;  %v513_v41 = vadd.f32 %v512_v38, %v511_v34 }
 0xd64   :  { %610 = vpush %v513_v41  ;;  %v536_v43 = vrot.slane %v535_v39, 1 }
 0xd65   :  { %612 = vpush %v525_v42 }
 0xd66   :  { %v537_v44 = vadd.f32 %v536_v43, %v535_v39 }
 0xd68   :  { %614 = vpush %v537_v44 }
 0xd81   :  { %s591_s27 = spop %590 }
 0xd82   :  { %398 = sst [smem:[#allocation8 + $0x2]] %s591_s27  ;;  %s593_s28 = spop %592 }
 0xd83   :  { %409 = sst [smem:[#allocation8 + $0x3]] %s593_s28 }
 0xd86   :  { %s595_s29 = spop %594 }
 0xd87   :  { %420 = sst [smem:[#allocation8 + $0x4]] %s595_s29  ;;  %s597_s30 = spop %596 }
 0xd88   :  { %432 = sst [smem:[#allocation8 + $0x5]] %s597_s30 }
 0xd89   :  { %s599_s5 = spop %598 }
 0xd8a   :  { %444 = sst [smem:[#allocation8 + $0xa]] %s599_s5  ;;  %s601_s6 = spop %600 }
 0xd8b   :  { %456 = sst [smem:[#allocation8 + $0x6]] %s601_s6 }
 0xd8e   :  { %s603_s7 = spop %602 }
 0xd8f   :  { %468 = sst [smem:[#allocation8 + $0xb]] %s603_s7  ;;  %s605_s8 = spop %604 }
 0xd90   :  { %480 = sst [smem:[#allocation8 + $0x7]] %s605_s8 }
 0xd91   :  { %s607_s9 = spop %606 }
 0xd92   :  { %492 = sst [smem:[#allocation8 + $0xc]] %s607_s9  ;;  %s609_s10 = spop %608 }
 0xd93   :  { %504 = sst [smem:[#allocation8 + $0x8]] %s609_s10 }
 0xd95   :  { %s611_s11 = spop %610 }
 0xd96   :  { %516 = sst [smem:[#allocation8 + $0xd]] %s611_s11  ;;  %s613_s12 = spop %612 }
 0xd97   :  { %528 = sst [smem:[#allocation8 + $0x9]] %s613_s12 }
 0xd99   :  { %s615_s1 = spop %614 }
 0xd9a   :  { %540 = sst [smem:[#allocation8 + $0xe]] %s615_s1 }
 0xd9b   :  { %711 = shalt.err (!%p708_p12)
}
 0xd9c   :  { %s725_s21 = smov [#allocation8]  }
 0xd9d   :  { %548 = dma.smem_to_hbm %s725_s21, 16, %s992_s4, [#allocation4]  }
 0xd9e   :  { %716 = dma.done.wait [#allocation4], 16  }
 0xd9f   :  { %717 = vsyncadd [#allocation4], 4294967280 }
 0xda0   :  { %552 = sfence }
 0xda1   :  { %553 = vsyncpa [#allocation3], 1 }
 0xda2   :  { %554 = vsyncpa [#allocation6], 1 }
 0xda3   :  { %555 = vsyncpa [#allocation4], 1 }

</bundles_post_ra>
